<compile_context>
chip_gen: v6e
topology: v6e:2x2x1
jax: 0.10.0
libtpu: 0.0.40
codegen_flags: <defaults>
</compile_context>

<pallas_src>
import functools

import jax
import jax.numpy as jnp
from jax.experimental import pallas as pl
from jax.experimental.pallas import tpu as pltpu

EPS = 1e-5
LANES = 128  # matmul output-channel padding (MXU lane width)


def _stats_kernel(lhs_ref, w_ref, sum_ref, ssq_ref):
    """Pass 1: conv tile -> per-channel sum / sum-of-squares partials.

    lhs_ref: (1, M, K)   im2col rows for this (batch, row-tile), K = 9*Cin
    w_ref  : (K, C)      conv weights, Cout zero-padded to C = 128
    sum_ref, ssq_ref: (1, 1, C) per-batch partial accumulators; resident only
                      across the row-tile ("arbitrary") axis -> megacore safe.
    """
    conv = jnp.dot(lhs_ref[0], w_ref[...], preferred_element_type=jnp.float32)

    @pl.when(pl.program_id(1) == 0)
    def _():
        sum_ref[...] = jnp.zeros_like(sum_ref)
        ssq_ref[...] = jnp.zeros_like(ssq_ref)

    sum_ref[...] += jnp.sum(conv, axis=0).reshape(1, 1, -1)
    ssq_ref[...] += jnp.sum(conv * conv, axis=0).reshape(1, 1, -1)


def _apply_kernel(lhs_ref, w_ref, scale_ref, shift_ref, out_ref, *,
                  tile_h, w_out, cpad):
    """Pass 2: conv -> fused BN (scale*x+shift) -> ReLU -> 2x2 max-pool."""
    c = w_ref.shape[-1]
    conv = jnp.dot(lhs_ref[0], w_ref[...], preferred_element_type=jnp.float32)
    y = jnp.maximum(conv * scale_ref[...] + shift_ref[...], 0.0)   # (M, C)

    # MaxPool2d(2): rows of the flat (tile_h*W, C) view are (h, w) with w
    # fastest, so W-pairs are adjacent rows and H-pairs are W/2 rows apart.
    # Channel lanes are never moved (no lane-crossing relayout).
    yw = y.reshape(tile_h * (w_out // 2), 2, c)
    y = jnp.maximum(yw[:, 0, :], yw[:, 1, :])                      # (tile_h*W/2, C)
    yh = y.reshape(tile_h // 2, 2, w_out // 2, c)
    y = jnp.maximum(yh[:, 0], yh[:, 1])                            # (tile_h/2, W/2, C)

    # Only cpad (>= Cout, multiple of 8) channels hit HBM instead of 128 lanes.
    out_ref[...] = y[:, :, :cpad].reshape(
        1, tile_h // 2, w_out // 2, cpad).astype(out_ref.dtype)


def _round_up(x, m):
    return -(-x // m) * m


def _pick_tile_h(h, w, m_max=1024):
    """Largest even divisor of h with tile_h*w <= m_max (keeps per-step MXU
    work in the few-hundred-rows sweet spot); fallback: smallest even divisor."""
    cands = [t for t in range(2, h + 1, 2) if h % t == 0]
    fits = [t for t in cands if t * w <= m_max]
    return max(fits) if fits else min(cands)


def conv_block(x_nchw, w_oihw, bias, gamma, beta, *, tile_h=None):
    """ConvBlock forward. Returns NCHW (N, Cout, H//2, W//2) like PyTorch."""
    f32 = jnp.float32
    N, Cin, H, W = x_nchw.shape
    Cout = w_oihw.shape[0]
    C = LANES
    K = 9 * Cin
    assert Cout <= C, "this kernel pads Cout up to 128 matmul lanes"
    assert H % 2 == 0 and W % 2 == 0, "MaxPool2d(2) needs even H and W"
    if tile_h is None:
        tile_h = _pick_tile_h(H, W)
    assert tile_h % 2 == 0 and H % tile_h == 0, (tile_h, H)
    n_row_tiles = H // tile_h
    M = tile_h * W
    # Pooled-output channel padding: multiple of 8 only (here == Cout), so the
    # HBM writeback is ~useful bytes rather than 128 f32 lanes per pixel.
    cpad = min(_round_up(Cout, 8), C)

    # ---- host prep --------------------------------------------------------
    # Lane-dense im2col: contraction (kh,kw,cin) packed on the minor dim.
    # One BlockSpec per pass, no halo/concat, no lane-sparse VMEM relayouts.
    x_nhwc = jnp.transpose(x_nchw, (0, 2, 3, 1)).astype(f32)
    xp = jnp.pad(x_nhwc, ((0, 0), (1, 1), (1, 1), (0, 0)))      # (N,H+2,W+2,Cin)
    taps = [xp[:, kh:kh + H, kw:kw + W, :] for kh in range(3) for kw in range(3)]
    lhs = jnp.stack(taps, axis=3).reshape(N, H * W, K)           # (N, H*W, 9*Cin)

    # Weights (Cout,Cin,3,3) -> (K, C) matching the (kh,kw,cin) im2col order.
    w_mat = jnp.transpose(w_oihw, (2, 3, 1, 0)).astype(f32).reshape(K, Cout)
    w_pad = jnp.zeros((K, C), f32).at[:, :Cout].set(w_mat)

    # Conv bias cancels exactly under batch-statistics BatchNorm -> unused.
    del bias

    grid = (N, n_row_tiles)
    lhs_spec = pl.BlockSpec((1, M, K), lambda n, i: (n, i, 0))
    w_spec = pl.BlockSpec((K, C), lambda n, i: (0, 0))
    vec_spec = pl.BlockSpec((1, C), lambda n, i: (0, 0))

    flops = 2 * N * H * W * K * C
    lhs_bytes = lhs.size * 4
    # Tiles are tiny here; 32 MiB scoped VMEM is safe on v5e/v6e (128 MiB
    # physical) and within the 64 MiB physical budget of v7x.
    vmem_limit = 32 * 1024 * 1024

    # ---- pass 1: BN batch statistics (per-batch partials, row axis reduced) -
    sum_nc, ssq_nc = pl.pallas_call(
        _stats_kernel,
        grid=grid,
        in_specs=[lhs_spec, w_spec],
        out_specs=(pl.BlockSpec((1, 1, C), lambda n, i: (n, 0, 0)),
                   pl.BlockSpec((1, 1, C), lambda n, i: (n, 0, 0))),
        out_shape=(jax.ShapeDtypeStruct((N, 1, C), f32),
                   jax.ShapeDtypeStruct((N, 1, C), f32)),
        compiler_params=pltpu.CompilerParams(
            dimension_semantics=("parallel", "arbitrary"),
            vmem_limit_bytes=vmem_limit),
        cost_estimate=pl.CostEstimate(
            flops=flops, transcendentals=0,
            bytes_accessed=lhs_bytes + w_pad.size * 4 + 2 * N * C * 4),
    )(lhs, w_pad)

    # Per-channel scale/shift (tiny host math): y = conv*scale + shift.
    # NOTE: E[x^2]-mean^2 in f32 is cancellation-prone if the conv output mean
    # dwarfs its std; switch to a centered/Welford scheme for that regime.
    cnt = jnp.float32(N * H * W)
    mean = jnp.sum(sum_nc, axis=(0, 1)) / cnt                    # (C,)
    var = jnp.maximum(jnp.sum(ssq_nc, axis=(0, 1)) / cnt - mean * mean, 0.0)
    inv = jax.lax.rsqrt(var + EPS)                               # biased var (PyTorch BN)
    gamma_pad = jnp.zeros((C,), f32).at[:Cout].set(gamma.astype(f32))
    beta_pad = jnp.zeros((C,), f32).at[:Cout].set(beta.astype(f32))
    scale = (gamma_pad * inv).reshape(1, C)
    shift = (beta_pad - mean * gamma_pad * inv).reshape(1, C)

    # ---- pass 2: conv -> BN -> ReLU -> 2x2 max-pool (fully parallel grid) ---
    out_bytes = N * (H // 2) * (W // 2) * cpad * 4
    apply_k = functools.partial(_apply_kernel, tile_h=tile_h, w_out=W, cpad=cpad)
    out_pk = pl.pallas_call(
        apply_k,
        grid=grid,
        in_specs=[lhs_spec, w_spec, vec_spec, vec_spec],
        out_specs=pl.BlockSpec((1, tile_h // 2, W // 2, cpad),
                               lambda n, i: (n, i, 0, 0)),
        out_shape=jax.ShapeDtypeStruct((N, H // 2, W // 2, cpad), f32),
        compiler_params=pltpu.CompilerParams(
            dimension_semantics=("parallel", "parallel"),
            vmem_limit_bytes=vmem_limit),
        cost_estimate=pl.CostEstimate(
            flops=flops, transcendentals=0,
            bytes_accessed=lhs_bytes + w_pad.size * 4 + out_bytes),
    )(lhs, w_pad, scale, shift)

    out = out_pk[..., :Cout]                     # drop padded channels (no-op here)
    return jnp.transpose(out, (0, 3, 1, 2))      # NCHW like PyTorch


def reference(x_nchw, w_oihw, bias, gamma, beta):
    x = jnp.transpose(x_nchw, (0, 2, 3, 1))
    k_hwio = jnp.transpose(w_oihw, (2, 3, 1, 0))
    conv = jax.lax.conv_general_dilated(
        x, k_hwio, (1, 1), "SAME",
        dimension_numbers=("NHWC", "HWIO", "NHWC")) + bias.reshape(1, 1, 1, -1)
    mean = jnp.mean(conv, axis=(0, 1, 2), keepdims=True)
    var = jnp.mean(jnp.square(conv - mean), axis=(0, 1, 2), keepdims=True)
    y = (conv - mean) * jax.lax.rsqrt(var + EPS) * gamma.reshape(1, 1, 1, -1) \
        + beta.reshape(1, 1, 1, -1)
    y = jnp.maximum(y, 0.0)
    y = jax.lax.reduce_window(y, -jnp.inf, jax.lax.max,
                              (1, 2, 2, 1), (1, 2, 2, 1), "VALID")
    return jnp.transpose(y, (0, 3, 1, 2))


if __name__ == "__main__":
    N, Cin, Cout, H, W = 2, 4, 8, 16, 16
    key = jax.random.PRNGKey(0)
    kx, kw_, kb = jax.random.split(key, 3)

    x = jax.random.normal(kx, (N, Cin, H, W), dtype=jnp.float32)       # NCHW
    w = jax.random.normal(kw_, (Cout, Cin, 3, 3), dtype=jnp.float32) * 0.1
    b = jax.random.normal(kb, (Cout,), dtype=jnp.float32) * 0.1
    gamma = jnp.ones((Cout,), dtype=jnp.float32)                       # BN affine init
    beta = jnp.zeros((Cout,), dtype=jnp.float32)

    out = jax.jit(conv_block)(x, w, b, gamma, beta)
    out = jax.block_until_ready(out)

    ref = reference(x, w, b, gamma, beta)
    assert out.shape == (N, Cout, H // 2, W // 2), out.shape
    max_err = float(jnp.max(jnp.abs(out - ref)))
    assert jnp.allclose(out, ref, atol=1e-4, rtol=1e-4), max_err
    print("KERNEL_OK")
</pallas_src>

<mosaic_0001>
module attributes {stable_mosaic.version = 11 : i64} {
  func.func @_stats_kernel(%arg0: i32, %arg1: i32, %arg2: memref<1x256x36xf32, #tpu.memory_space<vmem>>, %arg3: memref<36x128xf32, #tpu.memory_space<vmem>>, %arg4: memref<1x1x128xf32, #tpu.memory_space<vmem>>, %arg5: memref<1x1x128xf32, #tpu.memory_space<vmem>>) attributes {dimension_semantics = [#tpu.dimension_semantics<parallel>, #tpu.dimension_semantics<arbitrary>], iteration_bounds = array<i64: 2, 1>, scalar_prefetch = 0 : i64, scratch_operands = 0 : i64, tpu.core_type = #tpu.core_type<tc>, window_params = [{transform_indices = @transform_0, window_bounds = array<i64: 1, 256, 36>}, {pipeline_mode = #tpu.pipeline_mode<synchronous>, transform_indices = @transform_1, window_bounds = array<i64: 36, 128>}, {transform_indices = @transform_2, window_bounds = array<i64: 1, 1, 128>}, {transform_indices = @transform_3, window_bounds = array<i64: 1, 1, 128>}]} {
    %c0 = arith.constant 0 : index
    %c0_0 = arith.constant 0 : index
    %c0_1 = arith.constant 0 : index
    %0 = vector.load %arg2[%c0, %c0_0, %c0_1] : memref<1x256x36xf32, #tpu.memory_space<vmem>>, vector<1x256x36xf32>
    %1 = vector.shape_cast %0 : vector<1x256x36xf32> to vector<256x36xf32>
    %c0_2 = arith.constant 0 : index
    %c0_3 = arith.constant 0 : index
    %2 = vector.load %arg3[%c0_2, %c0_3] : memref<36x128xf32, #tpu.memory_space<vmem>>, vector<36x128xf32>
    %cst = arith.constant dense<0.000000e+00> : vector<256x128xf32>
    %3 = tpu.matmul %1, %2, %cst {dimension_numbers = #tpu.dot_dimension_numbers<[1], [0], [0], [1], [0, 0, 1, 1], [], []>} : vector<256x36xf32>, vector<36x128xf32>, vector<256x128xf32> -> vector<256x128xf32>
    %c0_i32 = arith.constant 0 : i32
    %4 = arith.cmpi eq, %arg1, %c0_i32 : i32
    %5 = arith.extui %4 : i1 to i32
    %c0_i32_4 = arith.constant 0 : i32
    %6 = arith.cmpi ne, %5, %c0_i32_4 : i32
    scf.if %6 {
      %cst_19 = arith.constant 0.000000e+00 : f32
      %18 = vector.broadcast %cst_19 : f32 to vector<1x1x128xf32>
      %c0_20 = arith.constant 0 : index
      %c0_21 = arith.constant 0 : index
      %c0_22 = arith.constant 0 : index
      %19 = vector.load %arg4[%c0_20, %c0_21, %c0_22] : memref<1x1x128xf32, #tpu.memory_space<vmem>>, vector<1x1x128xf32>
      tpu.vector_store %arg4[%c0_20, %c0_21, %c0_22], %18 {strides = array<i32>} : memref<1x1x128xf32, #tpu.memory_space<vmem>>, vector<1x1x128xf32>,
      %cst_23 = arith.constant 0.000000e+00 : f32
      %20 = vector.broadcast %cst_23 : f32 to vector<1x1x128xf32>
      %c0_24 = arith.constant 0 : index
      %c0_25 = arith.constant 0 : index
      %c0_26 = arith.constant 0 : index
      %21 = vector.load %arg5[%c0_24, %c0_25, %c0_26] : memref<1x1x128xf32, #tpu.memory_space<vmem>>, vector<1x1x128xf32>
      tpu.vector_store %arg5[%c0_24, %c0_25, %c0_26], %20 {strides = array<i32>} : memref<1x1x128xf32, #tpu.memory_space<vmem>>, vector<1x1x128xf32>,
    } else {
    }
    %c0_5 = arith.constant 0 : index
    %c0_6 = arith.constant 0 : index
    %c0_7 = arith.constant 0 : index
    %7 = vector.load %arg4[%c0_5, %c0_6, %c0_7] : memref<1x1x128xf32, #tpu.memory_space<vmem>>, vector<1x1x128xf32>
    %cst_8 = arith.constant dense<0.000000e+00> : vector<128xf32>
    %8 = vector.multi_reduction <add>, %3, %cst_8 [0] : vector<256x128xf32> to vector<128xf32>
    %9 = vector.shape_cast %8 : vector<128xf32> to vector<1x1x128xf32>
    %10 = arith.addf %7, %9 : vector<1x1x128xf32>
    %c0_9 = arith.constant 0 : index
    %c0_10 = arith.constant 0 : index
    %c0_11 = arith.constant 0 : index
    %11 = vector.load %arg4[%c0_9, %c0_10, %c0_11] : memref<1x1x128xf32, #tpu.memory_space<vmem>>, vector<1x1x128xf32>
    tpu.vector_store %arg4[%c0_9, %c0_10, %c0_11], %10 {strides = array<i32>} : memref<1x1x128xf32, #tpu.memory_space<vmem>>, vector<1x1x128xf32>,
    %c0_12 = arith.constant 0 : index
    %c0_13 = arith.constant 0 : index
    %c0_14 = arith.constant 0 : index
    %12 = vector.load %arg5[%c0_12, %c0_13, %c0_14] : memref<1x1x128xf32, #tpu.memory_space<vmem>>, vector<1x1x128xf32>
    %13 = arith.mulf %3, %3 : vector<256x128xf32>
    %cst_15 = arith.constant dense<0.000000e+00> : vector<128xf32>
    %14 = vector.multi_reduction <add>, %13, %cst_15 [0] : vector<256x128xf32> to vector<128xf32>
    %15 = vector.shape_cast %14 : vector<128xf32> to vector<1x1x128xf32>
    %16 = arith.addf %12, %15 : vector<1x1x128xf32>
    %c0_16 = arith.constant 0 : index
    %c0_17 = arith.constant 0 : index
    %c0_18 = arith.constant 0 : index
    %17 = vector.load %arg5[%c0_16, %c0_17, %c0_18] : memref<1x1x128xf32, #tpu.memory_space<vmem>>, vector<1x1x128xf32>
    tpu.vector_store %arg5[%c0_16, %c0_17, %c0_18], %16 {strides = array<i32>} : memref<1x1x128xf32, #tpu.memory_space<vmem>>, vector<1x1x128xf32>,
    return
  }
  func.func @transform_0(%arg0: i32, %arg1: i32) -> (i32, i32, i32) {
    %c0_i32 = arith.constant 0 : i32
    %c0_i32_0 = arith.constant 0 : i32
    return %arg0, %arg1, %c0_i32 : i32, i32, i32
  }
  func.func @transform_1(%arg0: i32, %arg1: i32) -> (i32, i32) {
    %c0_i32 = arith.constant 0 : i32
    %c0_i32_0 = arith.constant 0 : i32
    %c0_i32_1 = arith.constant 0 : i32
    return %c0_i32, %c0_i32_0 : i32, i32
  }
  func.func @transform_2(%arg0: i32, %arg1: i32) -> (i32, i32, i32) {
    %c0_i32 = arith.constant 0 : i32
    %c0_i32_0 = arith.constant 0 : i32
    %c0_i32_1 = arith.constant 0 : i32
    return %arg0, %c0_i32, %c0_i32_0 : i32, i32, i32
  }
  func.func @transform_3(%arg0: i32, %arg1: i32) -> (i32, i32, i32) {
    %c0_i32 = arith.constant 0 : i32
    %c0_i32_0 = arith.constant 0 : i32
    %c0_i32_1 = arith.constant 0 : i32
    return %arg0, %c0_i32, %c0_i32_0 : i32, i32, i32
  }
}

module attributes {stable_mosaic.version = 11 : i64} {
  func.func @_apply_kernel(%arg0: i32, %arg1: i32, %arg2: memref<1x256x36xf32, #tpu.memory_space<vmem>>, %arg3: memref<36x128xf32, #tpu.memory_space<vmem>>, %arg4: memref<1x128xf32, #tpu.memory_space<vmem>>, %arg5: memref<1x128xf32, #tpu.memory_space<vmem>>, %arg6: memref<1x8x8x8xf32, #tpu.memory_space<vmem>>) attributes {dimension_semantics = [#tpu.dimension_semantics<parallel>, #tpu.dimension_semantics<parallel>], iteration_bounds = array<i64: 2, 1>, scalar_prefetch = 0 : i64, scratch_operands = 0 : i64, tpu.core_type = #tpu.core_type<tc>, window_params = [{transform_indices = @transform_0, window_bounds = array<i64: 1, 256, 36>}, {pipeline_mode = #tpu.pipeline_mode<synchronous>, transform_indices = @transform_1, window_bounds = array<i64: 36, 128>}, {pipeline_mode = #tpu.pipeline_mode<synchronous>, transform_indices = @transform_2, window_bounds = array<i64: 1, 128>}, {pipeline_mode = #tpu.pipeline_mode<synchronous>, transform_indices = @transform_3, window_bounds = array<i64: 1, 128>}, {transform_indices = @transform_4, window_bounds = array<i64: 1, 8, 8, 8>}]} {
    %c0 = arith.constant 0 : index
    %c0_0 = arith.constant 0 : index
    %c0_1 = arith.constant 0 : index
    %0 = vector.load %arg2[%c0, %c0_0, %c0_1] : memref<1x256x36xf32, #tpu.memory_space<vmem>>, vector<1x256x36xf32>
    %1 = vector.shape_cast %0 : vector<1x256x36xf32> to vector<256x36xf32>
    %c0_2 = arith.constant 0 : index
    %c0_3 = arith.constant 0 : index
    %2 = vector.load %arg3[%c0_2, %c0_3] : memref<36x128xf32, #tpu.memory_space<vmem>>, vector<36x128xf32>
    %cst = arith.constant dense<0.000000e+00> : vector<256x128xf32>
    %3 = tpu.matmul %1, %2, %cst {dimension_numbers = #tpu.dot_dimension_numbers<[1], [0], [0], [1], [0, 0, 1, 1], [], []>} : vector<256x36xf32>, vector<36x128xf32>, vector<256x128xf32> -> vector<256x128xf32>
    %c0_4 = arith.constant 0 : index
    %c0_5 = arith.constant 0 : index
    %4 = vector.load %arg4[%c0_4, %c0_5] : memref<1x128xf32, #tpu.memory_space<vmem>>, vector<1x128xf32>
    %5 = vector.broadcast %4 : vector<1x128xf32> to vector<256x128xf32>
    %6 = arith.mulf %3, %5 : vector<256x128xf32>
    %c0_6 = arith.constant 0 : index
    %c0_7 = arith.constant 0 : index
    %7 = vector.load %arg5[%c0_6, %c0_7] : memref<1x128xf32, #tpu.memory_space<vmem>>, vector<1x128xf32>
    %8 = vector.broadcast %7 : vector<1x128xf32> to vector<256x128xf32>
    %9 = arith.addf %6, %8 : vector<256x128xf32>
    %cst_8 = arith.constant 0.000000e+00 : f32
    %10 = vector.broadcast %cst_8 : f32 to vector<256x128xf32>
    %11 = arith.maximumf %9, %10 : vector<256x128xf32>
    %12 = vector.shape_cast %11 : vector<256x128xf32> to vector<128x2x128xf32>
    %13 = vector.extract_strided_slice %12 {offsets = [0, 0, 0], sizes = [128, 1, 128], strides = [1, 1, 1]} : vector<128x2x128xf32> to vector<128x1x128xf32>
    %14 = vector.shape_cast %13 : vector<128x1x128xf32> to vector<128x128xf32>
    %15 = vector.extract_strided_slice %12 {offsets = [0, 1, 0], sizes = [128, 1, 128], strides = [1, 1, 1]} : vector<128x2x128xf32> to vector<128x1x128xf32>
    %16 = vector.shape_cast %15 : vector<128x1x128xf32> to vector<128x128xf32>
    %17 = arith.maximumf %14, %16 : vector<128x128xf32>
    %18 = vector.shape_cast %17 : vector<128x128xf32> to vector<8x2x8x128xf32>
    %19 = vector.extract_strided_slice %18 {offsets = [0, 0, 0, 0], sizes = [8, 1, 8, 128], strides = [1, 1, 1, 1]} : vector<8x2x8x128xf32> to vector<8x1x8x128xf32>
    %20 = vector.shape_cast %19 : vector<8x1x8x128xf32> to vector<8x8x128xf32>
    %21 = vector.extract_strided_slice %18 {offsets = [0, 1, 0, 0], sizes = [8, 1, 8, 128], strides = [1, 1, 1, 1]} : vector<8x2x8x128xf32> to vector<8x1x8x128xf32>
    %22 = vector.shape_cast %21 : vector<8x1x8x128xf32> to vector<8x8x128xf32>
    %23 = arith.maximumf %20, %22 : vector<8x8x128xf32>
    %24 = vector.extract_strided_slice %23 {offsets = [0, 0, 0], sizes = [8, 8, 8], strides = [1, 1, 1]} : vector<8x8x128xf32> to vector<8x8x8xf32>
    %25 = vector.shape_cast %24 : vector<8x8x8xf32> to vector<1x8x8x8xf32>
    %c0_9 = arith.constant 0 : index
    %c0_10 = arith.constant 0 : index
    %c0_11 = arith.constant 0 : index
    %c0_12 = arith.constant 0 : index
    %26 = vector.load %arg6[%c0_9, %c0_10, %c0_11, %c0_12] : memref<1x8x8x8xf32, #tpu.memory_space<vmem>>, vector<1x8x8x8xf32>
    tpu.vector_store %arg6[%c0_9, %c0_10, %c0_11, %c0_12], %25 {strides = array<i32>} : memref<1x8x8x8xf32, #tpu.memory_space<vmem>>, vector<1x8x8x8xf32>,
    return
  }
  func.func @transform_0(%arg0: i32, %arg1: i32) -> (i32, i32, i32) {
    %c0_i32 = arith.constant 0 : i32
    %c0_i32_0 = arith.constant 0 : i32
    return %arg0, %arg1, %c0_i32 : i32, i32, i32
  }
  func.func @transform_1(%arg0: i32, %arg1: i32) -> (i32, i32) {
    %c0_i32 = arith.constant 0 : i32
    %c0_i32_0 = arith.constant 0 : i32
    %c0_i32_1 = arith.constant 0 : i32
    return %c0_i32, %c0_i32_0 : i32, i32
  }
  func.func @transform_2(%arg0: i32, %arg1: i32) -> (i32, i32) {
    %c0_i32 = arith.constant 0 : i32
    %c0_i32_0 = arith.constant 0 : i32
    %c0_i32_1 = arith.constant 0 : i32
    return %c0_i32, %c0_i32_0 : i32, i32
  }
  func.func @transform_3(%arg0: i32, %arg1: i32) -> (i32, i32) {
    %c0_i32 = arith.constant 0 : i32
    %c0_i32_0 = arith.constant 0 : i32
    %c0_i32_1 = arith.constant 0 : i32
    return %c0_i32, %c0_i32_0 : i32, i32
  }
  func.func @transform_4(%arg0: i32, %arg1: i32) -> (i32, i32, i32, i32) {
    %c0_i32 = arith.constant 0 : i32
    %c0_i32_0 = arith.constant 0 : i32
    %c0_i32_1 = arith.constant 0 : i32
    return %arg0, %arg1, %c0_i32, %c0_i32_0 : i32, i32, i32, i32
  }
}

</mosaic_0001>

<bundles_post_ra>
// kernel: conv_block.2
= control target key start
LH: loop header
LB: loop body
LE: loop exit
PB: predicated region body
PF: predicated region fallthrough
CT: control target
= control target key end

     0   :  { %s989_s12 = smov 0   ;;  %s991_s13 = smov 0   ;;  %s1136_s0 = inlined_call_operand.vmem [shape: f32[2,256,36], index: 0, kind: input, shape index: {}]   ;;  %s1137_s1 = inlined_call_operand.vmem [shape: f32[36,128], index: 1, kind: input, shape index: {}]   ;;  %s1138_s2 = inlined_call_operand.vmem [shape: f32[2,1,128], index: 2, kind: output, shape index: {0}]   ;;  %s1139_s3 = inlined_call_operand.vmem [shape: f32[2,1,128], index: 3, kind: output, shape index: {1}]  }
   0x1   :  { %s993_s14 = smov 0  }
   0x2 LB: > { %s26_s15 = sadd.s32 1, %s962_s13  ;;  %p775_p0 = scmp.ge.s32.totalorder %s966_s14, 1  ;;  %s966_s14 = sphi %s993_s14, %s14_s14   ;;  %s962_s13 = sphi %s991_s13, %s1141_s13   ;;  %s958_s12 = sphi %s989_s12, %s1140_s12  }
   0x3   : > { %p28_p1 = scmp.ge.s32.totalorder %s26_s15, 2  ;;  %p159_p2 = scmp.lt.s32.totalorder %s966_s14, 3 }
   0x5   : > { %s1143_s15 = smov (%p28_p1, %s26_s15), 0  ;;  %p160_p3 = pnand %p775_p0, %p159_p2 }
   0x6   : > { %p189_p4 = scmp.lt.s32.totalorder (!%p160_p3), %s958_s12, 1 }
   0x7   : > { %163 = sbr.rel (%p160_p3) target bundleno = 299 (0x12b), region = 28 }
   0xc   : > { %v240_v0 = vld [vmem:[%s1137_s1 + $0x20] sm:$0xf]  ;;  %vm338_vm0 = vcmask 1043456   ;;  %v239_v1 = vld [vmem:[%s1137_s1 + $0x18] sm:$0xff]  ;;  %v238_v2 = vld [vmem:[%s1137_s1 + $0x10] sm:$0xff]  ;;  %s1145_s12 = smov (!%p189_p4, %s958_s12), 1 }
   0xd   : > { %851 = vmatprep.subr.msk.mxu0 %vm338_vm0, %v240_v0  ;;  %909 = vmatprep.subr.msk.mxu1 %vm338_vm0, %v240_v0  ;;  %v237_v3 = vld [vmem:[%s1137_s1 + $0x8] sm:$0xff]  ;;  %s813_s24 = sshll.u32 %s1145_s12, 8  ;;  %vm241_vm1 = vcmask 293888   ;;  %v236_v4 = vld [vmem:[%s1137_s1] sm:$0xff]  ;;  %s1098_s5 = scalar_lea.vmem %s1138_s2, %s1145_s12  ;;  %v968_v37 = vmov 0.0  }
   0xe   : > { %852 = vmatpush3.msk.msra.mxu0 %vm338_vm0, %v240_v0  ;;  %914 = vmatpush3.msk.msra.mxu1 %vm338_vm0, %v240_v0  ;;  %s1025_s27 = scalar_lea.vmem %s1136_s0, %s813_s24  ;;  %s1104_s8 = scalar_lea.vmem %s1139_s3, %s1145_s12  ;;  %571 = vst [vmem:[%s1098_s5] sm:$0x1] %v968_v37 }
   0xf   : > { %853 = vmatprep.subr.mxu0 %v239_v1  ;;  %910 = vmatprep.subr.mxu1 %v239_v1  ;;  %v204_v5 = vld [vmem:[%s1025_s27] sm:$0xff]  ;;  %v205_v6 = vld [vmem:[%s1025_s27 + $0x8] sm:$0xff]  ;;  %v206_v7 = vld [vmem:[%s1025_s27 + $0x10] sm:$0xff]  ;;  %572 = vst [vmem:[%s1104_s8] sm:$0x1] %v968_v37 }
  0x10   : > { %854 = vmatpush3.msra.mxu0 %v239_v1  ;;  %915 = vmatpush3.msra.mxu1 %v239_v1  ;;  %v220_v8 = vld [vmem:[%s1025_s27 + $0x80] sm:$0xff]  ;;  %v221_v9 = vld [vmem:[%s1025_s27 + $0x88] sm:$0xff]  ;;  %v207_v10 = vld [vmem:[%s1025_s27 + $0x18] sm:$0xff] }
  0x11   : > { %855 = vmatprep.subr.mxu0 %v238_v2  ;;  %911 = vmatprep.subr.mxu1 %v238_v2  ;;  %v222_v11 = vld [vmem:[%s1025_s27 + $0x90] sm:$0xff]  ;;  %v208_v12 = vld [vmem:[%s1025_s27 + $0x20] sm:$0xff]  ;;  %v223_v13 = vld [vmem:[%s1025_s27 + $0x98] sm:$0xff] }
  0x12   : > { %856 = vmatpush3.msra.mxu0 %v238_v2  ;;  %916 = vmatpush3.msra.mxu1 %v238_v2  ;;  %v224_v14 = vld [vmem:[%s1025_s27 + $0xa0] sm:$0xff]  ;;  %v209_v15 = vld [vmem:[%s1025_s27 + $0x28] sm:$0xff]  ;;  %v210_v16 = vld [vmem:[%s1025_s27 + $0x30] sm:$0xff] }
  0x13   : > { %857 = vmatprep.subr.mxu0 %v237_v3  ;;  %861 = vmatprep.mubr.msk.f32.mxu0 %vm241_vm1, %v204_v5  ;;  %v225_v17 = vld [vmem:[%s1025_s27 + $0xa8] sm:$0xff]  ;;  %v226_v18 = vld [vmem:[%s1025_s27 + $0xb0] sm:$0xff]  ;;  %v211_v19 = vld [vmem:[%s1025_s27 + $0x38] sm:$0xff] }
  0x14   : > { %858 = vmatpush3.msra.mxu0 %v237_v3  ;;  %912 = vmatprep.subr.mxu1 %v237_v3  ;;  %v212_v20 = vld [vmem:[%s1025_s27 + $0x40] sm:$0xff]  ;;  %v227_v21 = vld [vmem:[%s1025_s27 + $0xb8] sm:$0xff]  ;;  %v213_v23 = vld [vmem:[%s1025_s27 + $0x48] sm:$0xff] }
  0x15   : > { %859 = vmatprep.subr.mxu0 %v236_v4  ;;  %917 = vmatpush3.msra.mxu1 %v237_v3  ;;  %v228_v22 = vld [vmem:[%s1025_s27 + $0xc0] sm:$0xff]  ;;  %v214_v24 = vld [vmem:[%s1025_s27 + $0x50] sm:$0xff]  ;;  %v229_v25 = vld [vmem:[%s1025_s27 + $0xc8] sm:$0xff] }
  0x16   : > { %860 = vmatpush3.msra.mxu0 %v236_v4  ;;  %913 = vmatprep.subr.mxu1 %v236_v4  ;;  %v230_v26 = vld [vmem:[%s1025_s27 + $0xd0] sm:$0xff]  ;;  %v215_v27 = vld [vmem:[%s1025_s27 + $0x58] sm:$0xff]  ;;  %v216_v28 = vld [vmem:[%s1025_s27 + $0x60] sm:$0xff] }
  0x17   : > { %862 = vmatmul.mubr.msk.f32.vlgmr.msra.gmra.mxu0 %vm241_vm1, %v205_v6  ;;  %918 = vmatpush3.msra.mxu1 %v236_v4  ;;  %v231_v29 = vld [vmem:[%s1025_s27 + $0xd8] sm:$0xff]  ;;  %v232_v30 = vld [vmem:[%s1025_s27 + $0xe0] sm:$0xff]  ;;  %v217_v31 = vld [vmem:[%s1025_s27 + $0x68] sm:$0xff] }
  0x18   : > { %864 = vmatprep.mubr.msk.f32.mxu0 %vm241_vm1, %v206_v7  ;;  %885 = vmatprep.mubr.msk.f32.mxu1 %vm241_vm1, %v220_v8  ;;  %v218_v32 = vld [vmem:[%s1025_s27 + $0x70] sm:$0xff]  ;;  %v233_v33 = vld [vmem:[%s1025_s27 + $0xe8] sm:$0xff]  ;;  %v219_v35 = vld [vmem:[%s1025_s27 + $0x78] sm:$0xff] }
  0x19   : > { %886 = vmatmul.mubr.msk.f32.vlgmr.msra.gmra.mxu1 %vm241_vm1, %v221_v9  ;;  %v234_v34 = vld [vmem:[%s1025_s27 + $0xf0] sm:$0xff]  ;;  %v235_v36 = vld [vmem:[%s1025_s27 + $0xf8] sm:$0xff] }
  0x1a   : > { %888 = vmatprep.mubr.msk.f32.mxu1 %vm241_vm1, %v222_v11 }
  0x1b   : > { %865 = vmatmul.mubr.msk.f32.gmra.mxu0 %vm241_vm1, %v207_v10 }
  0x1c   : > { %867 = vmatprep.mubr.msk.f32.mxu0 %vm241_vm1, %v208_v12 }
  0x1d   : > { %889 = vmatmul.mubr.msk.f32.gmra.mxu1 %vm241_vm1, %v223_v13 }
  0x1e   : > { %891 = vmatprep.mubr.msk.f32.mxu1 %vm241_vm1, %v224_v14 }
  0x1f   : > { %868 = vmatmul.mubr.msk.f32.gmra.mxu0 %vm241_vm1, %v209_v15 }
  0x20   : > { %870 = vmatprep.mubr.msk.f32.mxu0 %vm241_vm1, %v210_v16 }
  0x21   : > { %892 = vmatmul.mubr.msk.f32.gmra.mxu1 %vm241_vm1, %v225_v17 }
  0x22   : > { %894 = vmatprep.mubr.msk.f32.mxu1 %vm241_vm1, %v226_v18 }
  0x23   : > { %871 = vmatmul.mubr.msk.f32.gmra.mxu0 %vm241_vm1, %v211_v19 }
  0x24   : > { %873 = vmatprep.mubr.msk.f32.mxu0 %vm241_vm1, %v212_v20 }
  0x25   : > { %895 = vmatmul.mubr.msk.f32.gmra.mxu1 %vm241_vm1, %v227_v21 }
  0x26   : > { %897 = vmatprep.mubr.msk.f32.mxu1 %vm241_vm1, %v228_v22 }
  0x27   : > { %874 = vmatmul.mubr.msk.f32.gmra.mxu0 %vm241_vm1, %v213_v23 }
  0x28   : > { %876 = vmatprep.mubr.msk.f32.mxu0 %vm241_vm1, %v214_v24 }
  0x29   : > { %898 = vmatmul.mubr.msk.f32.gmra.mxu1 %vm241_vm1, %v229_v25 }
  0x2a   : > { %900 = vmatprep.mubr.msk.f32.mxu1 %vm241_vm1, %v230_v26 }
  0x2b   : > { %877 = vmatmul.mubr.msk.f32.gmra.mxu0 %vm241_vm1, %v215_v27 }
  0x2c   : > { %879 = vmatprep.mubr.msk.f32.mxu0 %vm241_vm1, %v216_v28 }
  0x2d   : > { %901 = vmatmul.mubr.msk.f32.gmra.mxu1 %vm241_vm1, %v231_v29 }
  0x2e   : > { %903 = vmatprep.mubr.msk.f32.mxu1 %vm241_vm1, %v232_v30 }
  0x2f   : > { %880 = vmatmul.mubr.msk.f32.gmra.mxu0 %vm241_vm1, %v217_v31 }
  0x30   : > { %882 = vmatprep.mubr.msk.f32.mxu0 %vm241_vm1, %v218_v32 }
  0x31   : > { %904 = vmatmul.mubr.msk.f32.gmra.mxu1 %vm241_vm1, %v233_v33 }
  0x32   : > { %906 = vmatprep.mubr.msk.f32.mxu1 %vm241_vm1, %v234_v34 }
  0x33   : > { %883 = vmatmul.mubr.msk.f32.gmra.mxu0 %vm241_vm1, %v219_v35 }
  0x35   : > { %907 = vmatmul.mubr.msk.f32.gmra.mxu1 %vm241_vm1, %v235_v36 }
  0xd7   : > { %v863_v38 = vpop.f32.mrf.mxu0 }
  0xd8   : > { %v615_v44 = vmul.f32 %v863_v38, %v863_v38 }
  0xd9   : > { %v408_v39 = vpop.f32.mrf.mxu0  ;;  %v1108_v40 = vpop.f32.mrf.mxu1 }
  0xda   : > { %v614_v41 = vmul.f32 %v408_v39, %v408_v39  ;;  %v574_v45 = vadd.f32 %v863_v38, %v408_v39 }
  0xdb   : > { %v866_v42 = vpop.f32.mrf.mxu0  ;;  %v1110_v43 = vpop.f32.mrf.mxu1 }
  0xdc   : > { %v646_v47 = vadd.f32 %v615_v44, %v614_v41  ;;  %v617_v52 = vmul.f32 %v866_v42, %v866_v42 }
  0xdd   : > { %v418_v46 = vpop.f32.mrf.mxu0  ;;  %v1112_v51 = vpop.f32.mrf.mxu1 }
  0xde   : > { %v575_v48 = vadd.f32 %v574_v45, %v418_v46  ;;  %v616_v49 = vmul.f32 %v418_v46, %v418_v46 }
  0xdf   : > { %v869_v50 = vpop.f32.mrf.mxu0  ;;  %v498_v60 = vpop.f32.mrf.mxu1 }
  0xe0   : > { %v647_v53 = vadd.f32 %v646_v47, %v616_v49  ;;  %v576_v54 = vadd.f32 %v866_v42, %v575_v48  ;;  %v619_v61 = vmul.f32 %v869_v50, %v869_v50  ;;  %v630_v48 = vmul.f32 %v1110_v43, %v1110_v43 }
  0xe1   : > { %v428_v55 = vpop.f32.mrf.mxu0  ;;  %v893_v5 = vpop.f32.mrf.mxu1 }
  0xe2   : > { %v577_v56 = vadd.f32 %v576_v54, %v428_v55  ;;  %v618_v57 = vmul.f32 %v428_v55, %v428_v55  ;;  %v648_v58 = vadd.f32 %v647_v53, %v617_v52  ;;  %v632_v55 = vmul.f32 %v498_v60, %v498_v60 }
  0xe3   : > { %v872_v59 = vpop.f32.mrf.mxu0  ;;  %v508_v14 = vpop.f32.mrf.mxu1 }
  0xe4   : > { %v649_v62 = vadd.f32 %v648_v58, %v618_v57  ;;  %v578_v63 = vadd.f32 %v869_v50, %v577_v56  ;;  %v621_v6 = vmul.f32 %v872_v59, %v872_v59  ;;  %v631_v50 = vmul.f32 %v1108_v40, %v1108_v40 }
  0xe5   : > { %v438_v0 = vpop.f32.mrf.mxu0  ;;  %v896_v23 = vpop.f32.mrf.mxu1  ;;  %v633_v58 = vmul.f32 %v1112_v51, %v1112_v51 }
  0xe6   : > { %v579_v1 = vadd.f32 %v578_v63, %v438_v0  ;;  %v620_v2 = vmul.f32 %v438_v0, %v438_v0  ;;  %v650_v3 = vadd.f32 %v649_v62, %v619_v61  ;;  %v634_v63 = vmul.f32 %v508_v14, %v508_v14 }
  0xe7   : > { %v875_v4 = vpop.f32.mrf.mxu0  ;;  %v518_v32 = vpop.f32.mrf.mxu1 }
  0xe8   : > { %v651_v7 = vadd.f32 %v650_v3, %v620_v2  ;;  %v580_v8 = vadd.f32 %v872_v59, %v579_v1  ;;  %v623_v15 = vmul.f32 %v875_v4, %v875_v4  ;;  %v635_v1 = vmul.f32 %v893_v5, %v893_v5 }
  0xe9   : > { %v448_v9 = vpop.f32.mrf.mxu0  ;;  %v899_v41 = vpop.f32.mrf.mxu1 }
  0xea   : > { %v581_v10 = vadd.f32 %v580_v8, %v448_v9  ;;  %v622_v11 = vmul.f32 %v448_v9, %v448_v9  ;;  %v652_v12 = vadd.f32 %v651_v7, %v621_v6  ;;  %v636_v6 = vmul.f32 %v518_v32, %v518_v32 }
  0xeb   : > { %v878_v13 = vpop.f32.mrf.mxu0  ;;  %v528_v49 = vpop.f32.mrf.mxu1 }
  0xec   : > { %v653_v16 = vadd.f32 %v652_v12, %v622_v11  ;;  %v582_v17 = vadd.f32 %v875_v4, %v581_v10  ;;  %v625_v24 = vmul.f32 %v878_v13, %v878_v13  ;;  %v638_v11 = vmul.f32 %v528_v49, %v528_v49 }
  0xed   : > { %v458_v18 = vpop.f32.mrf.mxu0  ;;  %v902_v57 = vpop.f32.mrf.mxu1 }
  0xee   : > { %v583_v19 = vadd.f32 %v582_v17, %v458_v18  ;;  %v624_v20 = vmul.f32 %v458_v18, %v458_v18  ;;  %v654_v21 = vadd.f32 %v653_v16, %v623_v15  ;;  %v639_v15 = vmul.f32 %v899_v41, %v899_v41 }
  0xef   : > { %v881_v22 = vpop.f32.mrf.mxu0  ;;  %v538_v0 = vpop.f32.mrf.mxu1 }
  0xf0   : > { %v655_v25 = vadd.f32 %v654_v21, %v624_v20  ;;  %v584_v26 = vadd.f32 %v878_v13, %v583_v19  ;;  %v627_v33 = vmul.f32 %v881_v22, %v881_v22  ;;  %v640_v17 = vmul.f32 %v538_v0, %v538_v0 }
  0xf1   : > { %v468_v27 = vpop.f32.mrf.mxu0  ;;  %v905_v7 = vpop.f32.mrf.mxu1  ;;  %v641_v20 = vmul.f32 %v902_v57, %v902_v57 }
  0xf2   : > { %v585_v28 = vadd.f32 %v584_v26, %v468_v27  ;;  %v626_v29 = vmul.f32 %v468_v27, %v468_v27  ;;  %v656_v30 = vadd.f32 %v655_v25, %v625_v24  ;;  %v643_v27 = vmul.f32 %v905_v7, %v905_v7 }
  0xf3   : > { %v884_v31 = vpop.f32.mrf.mxu0  ;;  %v548_v13 = vpop.f32.mrf.mxu1 }
  0xf4   : > { %v657_v34 = vadd.f32 %v656_v30, %v626_v29  ;;  %v586_v35 = vadd.f32 %v881_v22, %v585_v28  ;;  %v629_v42 = vmul.f32 %v884_v31, %v884_v31  ;;  %v642_v24 = vmul.f32 %v548_v13, %v548_v13 }
  0xf5   : > { %v478_v36 = vpop.f32.mrf.mxu0  ;;  %v908_v19 = vpop.f32.mrf.mxu1 }
  0xf6   : > { %v587_v37 = vadd.f32 %v586_v35, %v478_v36  ;;  %v628_v38 = vmul.f32 %v478_v36, %v478_v36  ;;  %v658_v39 = vadd.f32 %v657_v34, %v627_v33 }
  0xf7   : > { %v558_v26 = vpop.f32.mrf.mxu1 }
  0xf8   : > { %v588_v44 = vadd.f32 %v884_v31, %v587_v37  ;;  %v659_v45 = vadd.f32 %v658_v39, %v628_v38  ;;  %v644_v30 = vmul.f32 %v558_v26, %v558_v26 }
  0xfa   : > { %v660_v46 = vadd.f32 %v659_v45, %v629_v42  ;;  %v589_v47 = vadd.f32 %v588_v44, %v1110_v43 }
  0xfc   : > { %v661_v52 = vadd.f32 %v660_v46, %v630_v48  ;;  %v590_v53 = vadd.f32 %v1108_v40, %v589_v47  ;;  %v573_v47 = vld [vmem:[%s1098_s5] sm:$0x1] }
  0xfe   : > { %v591_v54 = vadd.f32 %v590_v53, %v498_v60  ;;  %v662_v56 = vadd.f32 %v661_v52, %v631_v50  ;;  %v637_v60 = vmul.f32 %v896_v23, %v896_v23  ;;  %v613_v50 = vld [vmem:[%s1104_s8] sm:$0x1] }
 0x100   : > { %v663_v59 = vadd.f32 %v662_v56, %v632_v55  ;;  %v592_v61 = vadd.f32 %v1112_v51, %v591_v54 }
 0x102   : > { %v593_v62 = vadd.f32 %v592_v61, %v508_v14  ;;  %v664_v43 = vadd.f32 %v663_v59, %v633_v58 }
 0x104   : > { %v665_v2 = vadd.f32 %v664_v43, %v634_v63  ;;  %v594_v3 = vadd.f32 %v893_v5, %v593_v62 }
 0x106   : > { %v595_v4 = vadd.f32 %v594_v3, %v518_v32  ;;  %v666_v40 = vadd.f32 %v665_v2, %v635_v1  ;;  %v645_v32 = vmul.f32 %v908_v19, %v908_v19 }
 0x108   : > { %v667_v8 = vadd.f32 %v666_v40, %v636_v6  ;;  %v596_v9 = vadd.f32 %v896_v23, %v595_v4 }
 0x10a   : > { %v597_v10 = vadd.f32 %v596_v9, %v528_v49  ;;  %v668_v12 = vadd.f32 %v667_v8, %v637_v60 }
 0x10c   : > { %v669_v51 = vadd.f32 %v668_v12, %v638_v11  ;;  %v598_v16 = vadd.f32 %v899_v41, %v597_v10 }
 0x10e   : > { %v599_v14 = vadd.f32 %v598_v16, %v538_v0  ;;  %v670_v18 = vadd.f32 %v669_v51, %v639_v15 }
 0x110   : > { %v671_v5 = vadd.f32 %v670_v18, %v640_v17  ;;  %v600_v21 = vadd.f32 %v902_v57, %v599_v14 }
 0x112   : > { %v601_v22 = vadd.f32 %v600_v21, %v548_v13  ;;  %v672_v25 = vadd.f32 %v671_v5, %v641_v20 }
 0x114   : > { %v673_v23 = vadd.f32 %v672_v25, %v642_v24  ;;  %v602_v28 = vadd.f32 %v905_v7, %v601_v22 }
 0x116   : > { %v603_v29 = vadd.f32 %v602_v28, %v558_v26  ;;  %v674_v31 = vadd.f32 %v673_v23, %v643_v27 }
 0x118   : > { %v604_v33 = vadd.f32 %v908_v19, %v603_v29  ;;  %v675_v34 = vadd.f32 %v674_v31, %v644_v30 }
 0x11a   : > { %v605_v35 = vrot.slane %v604_v33, 4  ;;  %v676_v36 = vadd.f32 %v675_v34, %v645_v32 }
 0x11c   : > { %v606_v37 = vadd.f32 %v605_v35, %v604_v33  ;;  %v677_v38 = vrot.slane %v676_v36, 4 }
 0x11e   : > { %v607_v39 = vrot.slane %v606_v37, 2  ;;  %v678_v41 = vadd.f32 %v677_v38, %v676_v36 }
 0x120   : > { %v608_v42 = vadd.f32 %v607_v39, %v606_v37  ;;  %v679_v44 = vrot.slane %v678_v41, 2 }
 0x122   : > { %v609_v45 = vrot.slane %v608_v42, 1  ;;  %v680_v46 = vadd.f32 %v679_v44, %v678_v41 }
 0x124   : > { %v610_v48 = vadd.f32 %v609_v45, %v608_v42  ;;  %v681_v49 = vrot.slane %v680_v46, 1 }
 0x126   : > { %v611_v52 = vadd.f32 %v610_v48, %v573_v47  ;;  %v682_v53 = vadd.f32 %v681_v49, %v680_v46 }
 0x128   : > { %612 = vst [vmem:[%s1098_s5] sm:$0x1] %v611_v52  ;;  %v683_v54 = vadd.f32 %v682_v53, %v613_v50 }
 0x12a   : > { %684 = vst [vmem:[%s1104_s8] sm:$0x1] %v683_v54 }
 0x12b PF: > { %s14_s14 = sadd.s32 1, %s966_s14   ;;  %s1140_s12 = smov %s962_s13 }
 0x12c   : > { %p11_p5 = scmp.ge.s32.totalorder %s14_s14, 4   ;;  %s1141_s13 = smov %s1143_s15 }
 0x12e   :  { %13 = sbr.rel (!%p11_p5) target bundleno = 2 (0x2), region = 74 }

// kernel: conv_block.3
= control target key start
LH: loop header
LB: loop body
LE: loop exit
PB: predicated region body
PF: predicated region fallthrough
CT: control target
= control target key end

     0   :  { %s2835_s15 = smov 0   ;;  %s2837_s16 = smov 0   ;;  %s3462_s0 = inlined_call_operand.vmem [shape: f32[2,256,36], index: 0, kind: input, shape index: {}]   ;;  %s3463_s1 = inlined_call_operand.vmem [shape: f32[36,128], index: 1, kind: input, shape index: {}]   ;;  %s3464_s2 = inlined_call_operand.vmem [shape: f32[1,128], index: 2, kind: input, shape index: {}]   ;;  %s3465_s3 = inlined_call_operand.vmem [shape: f32[1,128], index: 3, kind: input, shape index: {}]   ;;  %s3466_s4 = inlined_call_operand.vmem [shape: f32[2,8,8,8], index: 4, kind: output, shape index: {}]  }
   0x1   :  { %s2839_s17 = smov 0  }
   0x2 LB: > { %s26_s18 = sadd.s32 1, %s2803_s16  ;;  %p2481_p0 = scmp.ge.s32.totalorder %s2807_s17, 1  ;;  %s2807_s17 = sphi %s2839_s17, %s14_s17   ;;  %s2803_s16 = sphi %s2837_s16, %s3468_s16   ;;  %s2799_s15 = sphi %s2835_s15, %s3467_s15  }
   0x3   : > { %p28_p1 = scmp.ge.s32.totalorder %s26_s18, 2  ;;  %p183_p2 = scmp.lt.s32.totalorder %s2807_s17, 3 }
   0x5   : > { %s3470_s18 = smov (%p28_p1, %s26_s18), 0  ;;  %p184_p3 = pnand %p2481_p0, %p183_p2 }
   0x6   : > { %p218_p4 = scmp.lt.s32.totalorder (!%p184_p3), %s2799_s15, 1 }
   0x7   : > { %187 = sbr.rel (%p184_p3) target bundleno = 398 (0x18e), region = 36 }
   0xc   : > { %v273_v0 = vld [vmem:[%s3463_s1 + $0x20] sm:$0xf]  ;;  %vm371_vm0 = vcmask 1043456   ;;  %v272_v1 = vld [vmem:[%s3463_s1 + $0x18] sm:$0xff]  ;;  %v271_v2 = vld [vmem:[%s3463_s1 + $0x10] sm:$0xff]  ;;  %s3472_s15 = smov (!%p218_p4, %s2799_s15), 1  ;;  %v746_v39 = vlaneseq }
   0xd   : > { %2690 = vmatprep.subr.msk.mxu0 %vm371_vm0, %v273_v0  ;;  %2748 = vmatprep.subr.msk.mxu1 %vm371_vm0, %v273_v0  ;;  %v270_v3 = vld [vmem:[%s3463_s1 + $0x8] sm:$0xff]  ;;  %s2651_s27 = sshll.u32 %s3472_s15, 8  ;;  %v269_v4 = vld [vmem:[%s3463_s1] sm:$0xff]  ;;  %vm274_vm1 = vcmask 293888   ;;  %v2809_v37 = vmov 1983009808  }
   0xe   : > { %2691 = vmatpush3.msk.msra.mxu0 %vm371_vm0, %v273_v0  ;;  %2753 = vmatpush3.msk.msra.mxu1 %vm371_vm0, %v273_v0  ;;  %s2871_s30 = scalar_lea.vmem %s3462_s0, %s2651_s27  ;;  %v744_v38 = vunpack.c.l.s4 %v2809_v37  ;;  %v2943_v40 = vld [vmem:[%s3464_s2] ss:$0 sm:$0xff]  ;;  %v747_v42 = vshrl.u32 %v746_v39, 7  ;;  %vm2310_vm2 = vcmask 1041409   ;;  %vm2312_vm3 = vcmask 1042434   ;;  %s2652_s11 = sshll.u32 %s3472_s15, 6 }
   0xf   : > { %2692 = vmatprep.subr.mxu0 %v272_v1  ;;  %2749 = vmatprep.subr.mxu1 %v272_v1  ;;  %v237_v5 = vld [vmem:[%s2871_s30] sm:$0xff]  ;;  %v238_v7 = vld [vmem:[%s2871_s30 + $0x8] sm:$0xff]  ;;  %v239_v9 = vld [vmem:[%s2871_s30 + $0x10] sm:$0xff]  ;;  %vm2314_vm4 = vcmask 1043459   ;;  %vm2316_vm5 = vcmask 1044484   ;;  %vm2318_vm6 = vcmask 1045509   ;;  %s3087_s14 = scalar_lea.vmem %s3466_s4, %s2652_s11 }
  0x10   : > { %2693 = vmatpush3.msra.mxu0 %v272_v1  ;;  %2754 = vmatpush3.msra.mxu1 %v272_v1  ;;  %v253_v6 = vld [vmem:[%s2871_s30 + $0x80] sm:$0xff]  ;;  %v254_v8 = vld [vmem:[%s2871_s30 + $0x88] sm:$0xff]  ;;  %v255_v10 = vld [vmem:[%s2871_s30 + $0x90] sm:$0xff]  ;;  %v745_v41 = vunpack.c.0.s8 %v744_v38  ;;  %vm2320_vm7 = vcmask 1046534   ;;  %vm2322_vm8 = vcmask 1047559   ;;  %vm2381_vm9 = vcmask 64512  }
  0x11   : > { %2694 = vmatprep.subr.mxu0 %v271_v2  ;;  %2750 = vmatprep.subr.mxu1 %v271_v2  ;;  %v240_v11 = vld [vmem:[%s2871_s30 + $0x18] sm:$0xff]  ;;  %v241_v13 = vld [vmem:[%s2871_s30 + $0x20] sm:$0xff]  ;;  %v242_v15 = vld [vmem:[%s2871_s30 + $0x28] sm:$0xff] }
  0x12   : > { %2695 = vmatpush3.msra.mxu0 %v271_v2  ;;  %2755 = vmatpush3.msra.mxu1 %v271_v2  ;;  %v256_v12 = vld [vmem:[%s2871_s30 + $0x98] sm:$0xff]  ;;  %v257_v14 = vld [vmem:[%s2871_s30 + $0xa0] sm:$0xff]  ;;  %v258_v16 = vld [vmem:[%s2871_s30 + $0xa8] sm:$0xff]  ;;  %v2953_v51 = vsub.s32 %v745_v41, %v747_v42 }
  0x13   : > { %2696 = vmatprep.subr.mxu0 %v270_v3  ;;  %2751 = vmatprep.subr.mxu1 %v270_v3  ;;  %v243_v17 = vld [vmem:[%s2871_s30 + $0x30] sm:$0xff]  ;;  %v244_v19 = vld [vmem:[%s2871_s30 + $0x38] sm:$0xff]  ;;  %v245_v21 = vld [vmem:[%s2871_s30 + $0x40] sm:$0xff] }
  0x14   : > { %2697 = vmatpush3.msra.mxu0 %v270_v3  ;;  %2756 = vmatpush3.msra.mxu1 %v270_v3  ;;  %v259_v18 = vld [vmem:[%s2871_s30 + $0xb0] sm:$0xff]  ;;  %v260_v20 = vld [vmem:[%s2871_s30 + $0xb8] sm:$0xff]  ;;  %v261_v22 = vld [vmem:[%s2871_s30 + $0xc0] sm:$0xff] }
  0x15   : > { %2698 = vmatprep.subr.mxu0 %v269_v4  ;;  %2752 = vmatprep.subr.mxu1 %v269_v4  ;;  %v246_v23 = vld [vmem:[%s2871_s30 + $0x48] sm:$0xff]  ;;  %v247_v25 = vld [vmem:[%s2871_s30 + $0x50] sm:$0xff]  ;;  %v248_v27 = vld [vmem:[%s2871_s30 + $0x58] sm:$0xff] }
  0x16   : > { %2699 = vmatpush3.msra.mxu0 %v269_v4  ;;  %2757 = vmatpush3.msra.mxu1 %v269_v4  ;;  %v262_v24 = vld [vmem:[%s2871_s30 + $0xc8] sm:$0xff]  ;;  %v263_v26 = vld [vmem:[%s2871_s30 + $0xd0] sm:$0xff]  ;;  %v264_v28 = vld [vmem:[%s2871_s30 + $0xd8] sm:$0xff] }
  0x17   : > { %2700 = vmatprep.mubr.msk.f32.mxu0 %vm274_vm1, %v237_v5  ;;  %2724 = vmatprep.mubr.msk.f32.mxu1 %vm274_vm1, %v253_v6  ;;  %v249_v29 = vld [vmem:[%s2871_s30 + $0x60] sm:$0xff]  ;;  %v250_v31 = vld [vmem:[%s2871_s30 + $0x68] sm:$0xff]  ;;  %v251_v33 = vld [vmem:[%s2871_s30 + $0x70] sm:$0xff] }
  0x18   : > { %2701 = vmatmul.mubr.msk.f32.vlgmr.msra.gmra.mxu0 %vm274_vm1, %v238_v7  ;;  %2725 = vmatmul.mubr.msk.f32.vlgmr.msra.gmra.mxu1 %vm274_vm1, %v254_v8  ;;  %v265_v30 = vld [vmem:[%s2871_s30 + $0xe0] sm:$0xff]  ;;  %v266_v32 = vld [vmem:[%s2871_s30 + $0xe8] sm:$0xff]  ;;  %v267_v34 = vld [vmem:[%s2871_s30 + $0xf0] sm:$0xff] }
  0x19   : > { %2703 = vmatprep.mubr.msk.f32.mxu0 %vm274_vm1, %v239_v9  ;;  %2727 = vmatprep.mubr.msk.f32.mxu1 %vm274_vm1, %v255_v10  ;;  %v252_v35 = vld [vmem:[%s2871_s30 + $0x78] sm:$0xff]  ;;  %v2948_v44 = vld [vmem:[%s3465_s3] ss:$0 sm:$0xff] }
  0x1a   : > { %v268_v36 = vld [vmem:[%s2871_s30 + $0xf8] sm:$0xff] }
  0x1c   : > { %2704 = vmatmul.mubr.msk.f32.gmra.mxu0 %vm274_vm1, %v240_v11  ;;  %2728 = vmatmul.mubr.msk.f32.gmra.mxu1 %vm274_vm1, %v256_v12 }
  0x1d   : > { %2706 = vmatprep.mubr.msk.f32.mxu0 %vm274_vm1, %v241_v13  ;;  %2730 = vmatprep.mubr.msk.f32.mxu1 %vm274_vm1, %v257_v14 }
  0x20   : > { %2707 = vmatmul.mubr.msk.f32.gmra.mxu0 %vm274_vm1, %v242_v15  ;;  %2731 = vmatmul.mubr.msk.f32.gmra.mxu1 %vm274_vm1, %v258_v16 }
  0x21   : > { %2709 = vmatprep.mubr.msk.f32.mxu0 %vm274_vm1, %v243_v17  ;;  %2733 = vmatprep.mubr.msk.f32.mxu1 %vm274_vm1, %v259_v18 }
  0x24   : > { %2710 = vmatmul.mubr.msk.f32.gmra.mxu0 %vm274_vm1, %v244_v19  ;;  %2734 = vmatmul.mubr.msk.f32.gmra.mxu1 %vm274_vm1, %v260_v20 }
  0x25   : > { %2712 = vmatprep.mubr.msk.f32.mxu0 %vm274_vm1, %v245_v21  ;;  %2736 = vmatprep.mubr.msk.f32.mxu1 %vm274_vm1, %v261_v22  ;;  %v2969_v21 = vsub.s32 0, %v747_v42 }
  0x28   : > { %2713 = vmatmul.mubr.msk.f32.gmra.mxu0 %vm274_vm1, %v246_v23  ;;  %2737 = vmatmul.mubr.msk.f32.gmra.mxu1 %vm274_vm1, %v262_v24 }
  0x29   : > { %2715 = vmatprep.mubr.msk.f32.mxu0 %vm274_vm1, %v247_v25  ;;  %2739 = vmatprep.mubr.msk.f32.mxu1 %vm274_vm1, %v263_v26 }
  0x2c   : > { %2716 = vmatmul.mubr.msk.f32.gmra.mxu0 %vm274_vm1, %v248_v27  ;;  %2740 = vmatmul.mubr.msk.f32.gmra.mxu1 %vm274_vm1, %v264_v28 }
  0x2d   : > { %2718 = vmatprep.mubr.msk.f32.mxu0 %vm274_vm1, %v249_v29  ;;  %2742 = vmatprep.mubr.msk.f32.mxu1 %vm274_vm1, %v265_v30 }
  0x30   : > { %2719 = vmatmul.mubr.msk.f32.gmra.mxu0 %vm274_vm1, %v250_v31  ;;  %2743 = vmatmul.mubr.msk.f32.gmra.mxu1 %vm274_vm1, %v266_v32 }
  0x31   : > { %2721 = vmatprep.mubr.msk.f32.mxu0 %vm274_vm1, %v251_v33  ;;  %2745 = vmatprep.mubr.msk.f32.mxu1 %vm274_vm1, %v267_v34 }
  0x34   : > { %2722 = vmatmul.mubr.msk.f32.gmra.mxu0 %vm274_vm1, %v252_v35  ;;  %2746 = vmatmul.mubr.msk.f32.gmra.mxu1 %vm274_vm1, %v268_v36 }
  0xd8   : > { %v2702_v43 = vpop.f32.mrf.mxu0  ;;  %v2726_v45 = vpop.f32.mrf.mxu1 }
  0xd9   : > { %v608_v46 = vmul.f32 %v2702_v43, %v2943_v40  ;;  %v624_v47 = vmul.f32 %v2726_v45, %v2943_v40 }
  0xda   : > { %v441_v48 = vpop.f32.mrf.mxu0  ;;  %v521_v49 = vpop.f32.mrf.mxu1 }
  0xdb   : > { %v647_v50 = vadd.f32 %v2948_v44, %v608_v46  ;;  %v663_v52 = vadd.f32 %v2948_v44, %v624_v47  ;;  %v607_v53 = vmul.f32 %v2943_v40, %v441_v48  ;;  %v623_v54 = vmul.f32 %v2943_v40, %v521_v49 }
  0xdc   : > { %v2705_v58 = vpop.f32.mrf.mxu0  ;;  %v2729_v2 = vpop.f32.mrf.mxu1 }
  0xdd   : > { %v679_v55 = vmax.f32 %v647_v50, 0.0  ;;  %v695_v56 = vmax.f32 %v663_v52, 0.0  ;;  %v646_v57 = vadd.f32 %v2948_v44, %v607_v53  ;;  %v662_v0 = vadd.f32 %v2948_v44, %v623_v54 }
  0xde   : > { %v610_v1 = vmul.f32 %v2705_v58, %v2943_v40  ;;  %v626_v11 = vmul.f32 %v2729_v2, %v2943_v40  ;;  %v451_v2 = vpop.f32.mrf.mxu0 }
  0xdf   : > { %v759_v59 = vcombine.high %v679_v55, %v679_v55  ;;  %v766_v60 = vrot.slane %v679_v55, %v2953_v51  ;;  %v1031_v61 = vcombine.high %v695_v56, %v695_v56  ;;  %v1038_v62 = vrot.slane %v695_v56, %v2953_v51 }
  0xe0   : > { %v678_v63 = vmax.f32 %v646_v57, 0.0  ;;  %v694_v14 = vmax.f32 %v662_v0, 0.0  ;;  %v649_v15 = vadd.f32 %v2948_v44, %v610_v1  ;;  %v665_v26 = vadd.f32 %v2948_v44, %v626_v11 }
  0xe1   : > { %v773_v3 = vrot.slane %v759_v59, %v2953_v51  ;;  %v774_v4 = vcombine.high %v766_v60, %v766_v60  ;;  %v1045_v5 = vrot.slane %v1031_v61, %v2953_v51  ;;  %v1046_v6 = vcombine.high %v1038_v62, %v1038_v62 }
  0xe2   : > { %v742_v7 = vcombine.high %v678_v63, %v678_v63  ;;  %v2525_v9 = vrot.slane %v766_v60, 9  ;;  %v2589_v10 = vrot.slane %v1038_v62, 9  ;;  %v749_v13 = vrot.slane %v678_v63, %v2953_v51 }
  0xe3   : > { %v775_v8 = vcombine.high %v773_v3, %v773_v3  ;;  %v1047_v12 = vcombine.high %v1045_v5, %v1045_v5  ;;  %v2526_v16 = vrot.slane %v774_v4, 9  ;;  %v2527_v17 = vrot.slane %v773_v3, 9 }
  0xe4   : > { %v2590_v18 = vrot.slane %v1046_v6, 9  ;;  %v756_v19 = vrot.slane %v742_v7, %v2953_v51  ;;  %v2591_v22 = vrot.slane %v1045_v5, 9  ;;  %v2971_v23 = vmax.f32 %v766_v60, %v2525_v9  ;;  %v531_v7 = vpop.f32.mrf.mxu1 }
  0xe5   : > { %v2528_v20 = vrot.slane %v775_v8, 9  ;;  %v2592_v24 = vrot.slane %v1047_v12, 9  ;;  %v2973_v25 = vmax.f32 %v1038_v62, %v2589_v10  ;;  %v757_v27 = vcombine.high %v749_v13, %v749_v13 }
  0xe6   : > { %v758_v28 = vcombine.high %v756_v19, %v756_v19  ;;  %v1014_v29 = vcombine.high %v694_v14, %v694_v14  ;;  %v1021_v30 = vrot.slane %v694_v14, %v2953_v51  ;;  %v2977_v31 = vmax.f32 %v774_v4, %v2526_v16 }
  0xe7   : > { %v2979_v32 = vmax.f32 %v773_v3, %v2527_v17  ;;  %v2981_v33 = vmax.f32 %v1046_v6, %v2590_v18  ;;  %v681_v34 = vmax.f32 %v649_v15, 0.0  ;;  %v2983_v35 = vmax.f32 %v775_v8, %v2528_v20 }
  0xe8   : > { %v2985_v36 = vmax.f32 %v1045_v5, %v2591_v22  ;;  %v2521_v37 = vrot.slane %v749_v13, 9  ;;  %v1028_v38 = vrot.slane %v1014_v29, %v2953_v51  ;;  %v1029_v39 = vcombine.high %v1021_v30, %v1021_v30  ;;  %v2708_v22 = vpop.f32.mrf.mxu0 }
  0xe9   : > { %v793_v41 = vcombine.high %v681_v34, %v681_v34  ;;  %v800_v42 = vrot.slane %v681_v34, %v2953_v51  ;;  %v697_v43 = vmax.f32 %v665_v26, 0.0  ;;  %v2989_v45 = vmax.f32 %v1047_v12, %v2592_v24 }
  0xea   : > { %v2522_v46 = vrot.slane %v757_v27, 9  ;;  %v2523_v47 = vrot.slane %v756_v19, 9  ;;  %v2524_v48 = vrot.slane %v758_v28, 9  ;;  %v2992_v54 = vmax.f32 %v749_v13, %v2521_v37 }
  0xeb   : > { %v807_v49 = vrot.slane %v793_v41, %v2953_v51  ;;  %v808_v50 = vcombine.high %v800_v42, %v800_v42  ;;  %v2533_v52 = vrot.slane %v800_v42, 9  ;;  %v1065_v53 = vcombine.high %v697_v43, %v697_v43 }
  0xec   : > { %v1030_v55 = vcombine.high %v1028_v38, %v1028_v38  ;;  %v2585_v56 = vrot.slane %v1021_v30, 9  ;;  %v1072_v57 = vrot.slane %v697_v43, %v2953_v51  ;;  %v2586_v58 = vrot.slane %v1029_v39, 9 }
  0xed   : > { %v809_v59 = vcombine.high %v807_v49, %v807_v49  ;;  %v2534_v60 = vrot.slane %v808_v50, 9  ;;  %v2535_v61 = vrot.slane %v807_v49, 9  ;;  %v2587_v62 = vrot.slane %v1028_v38, 9 }
  0xee   : > { %v1079_v63 = vrot.slane %v1065_v53, %v2953_v51  ;;  %v1080_v0 = vcombine.high %v1072_v57, %v1072_v57  ;;  %v2597_v1 = vrot.slane %v1072_v57, 9  ;;  %v1810_v4 = vmax.f32 %v800_v42, %v2533_v52 }
  0xef   : > { %v2536_v3 = vrot.slane %v809_v59, 9  ;;  %v1811_v5 = vmax.f32 %v808_v50, %v2534_v60  ;;  %v1812_v6 = vmax.f32 %v807_v49, %v2535_v61  ;;  %v2996_v12 = vmax.f32 %v757_v27, %v2522_v46  ;;  %v2732_v27 = vpop.f32.mrf.mxu1 }
  0xf0   : > { %v1081_v8 = vcombine.high %v1079_v63, %v1079_v63  ;;  %v2598_v9 = vrot.slane %v1080_v0, 9  ;;  %v2599_v10 = vrot.slane %v1079_v63, 9  ;;  %v1874_v11 = vmax.f32 %v1072_v57, %v2597_v1 }
  0xf1   : > { %v2998_v13 = vmax.f32 %v756_v19, %v2523_v47  ;;  %v3000_v14 = vmax.f32 %v758_v28, %v2524_v48  ;;  %v1813_v15 = vmax.f32 %v809_v59, %v2536_v3  ;;  %v3002_v16 = vmax.f32 %v1021_v30, %v2585_v56  ;;  %v461_v56 = vpop.f32.mrf.mxu0  ;;  %v541_v57 = vpop.f32.mrf.mxu1 }
  0xf2   : > { %v2600_v17 = vrot.slane %v1081_v8, 9  ;;  %v1875_v18 = vmax.f32 %v1080_v0, %v2598_v9  ;;  %v1876_v20 = vmax.f32 %v1079_v63, %v2599_v10  ;;  %v2588_v24 = vrot.slane %v1030_v55, 9 }
  0xf3   : > { %v3004_v26 = vmax.f32 %v1029_v39, %v2586_v58  ;;  %v1930_v29 = vmax.f32 %v2971_v23, %v1810_v4  ;;  %v609_v34 = vmul.f32 %v2943_v40, %v451_v2  ;;  %v3008_v37 = vmax.f32 %v1028_v38, %v2587_v62 }
  0xf4   : > { %v1931_v19 = vmax.f32 %v2977_v31, %v1811_v5  ;;  %v1932_v28 = vmax.f32 %v2979_v32, %v1812_v6  ;;  %v1962_v30 = vmax.f32 %v2973_v25, %v1874_v11  ;;  %v1933_v41 = vmax.f32 %v2983_v35, %v1813_v15 }
  0xf5   : > { %v648_v42 = vadd.f32 %v2948_v44, %v609_v34  ;;  %v625_v39 = vmul.f32 %v2943_v40, %v531_v7  ;;  %v612_v43 = vmul.f32 %v2708_v22, %v2943_v40  ;;  %v3017_v23 = vmax.f32 %v1081_v8, %v2600_v17 }
  0xf6   : > { %v1963_v46 = vmax.f32 %v2981_v33, %v1875_v18  ;;  %v1964_v38 = vmax.f32 %v2985_v36, %v1876_v20  ;;  %v628_v31 = vmul.f32 %v2732_v27, %v2943_v40  ;;  %v3022_v47 = vmax.f32 %v1030_v55, %v2588_v24 }
  0xf7   : > { %v3025_v25 = vrot.slane %v1930_v29, %v2969_v21  ;;  %v680_v32 = vmax.f32 %v648_v42, 0.0  ;;  %v664_v35 = vadd.f32 %v2948_v44, %v625_v39  ;;  %v3029_v48 = vrot.slane %v1931_v19, %v2969_v21 }
  0xf8   : > { %v3032_v49 = vrot.slane %v1932_v28, %v2969_v21  ;;  %v3035_v33 = vrot.slane %v1962_v30, %v2969_v21  ;;  %v651_v36 = vadd.f32 %v2948_v44, %v612_v43  ;;  %v3039_v50 = vrot.slane %v1933_v41, %v2969_v21 }
  0xf9   : > { %v776_v52 = vcombine.high %v680_v32, %v680_v32  ;;  %v783_v53 = vrot.slane %v680_v32, %v2953_v51  ;;  %v696_v55 = vmax.f32 %v664_v35, 0.0  ;;  %v1965_v58 = vmax.f32 %v2989_v45, %v3017_v23 }
  0xfa   : > { %v3045_v59 = vrot.slane %v1963_v46, %v2969_v21  ;;  %v3048_v60 = vrot.slane %v1964_v38, %v2969_v21  ;;  %v667_v61 = vadd.f32 %v2948_v44, %v628_v31  ;;  %v683_v3 = vmax.f32 %v651_v36, 0.0 }
  0xfb   : > { %v790_v62 = vrot.slane %v776_v52, %v2953_v51  ;;  %v791_v63 = vcombine.high %v783_v53, %v783_v53  ;;  %v2529_v0 = vrot.slane %v783_v53, 9  ;;  %v1048_v1 = vcombine.high %v696_v55, %v696_v55 }
  0xfc   : > { %v1055_v2 = vrot.slane %v696_v55, %v2953_v51  ;;  %v611_v45 = vmul.f32 %v2943_v40, %v461_v56  ;;  %v627_v4 = vmul.f32 %v2943_v40, %v541_v57  ;;  %v699_v15 = vmax.f32 %v667_v61, 0.0 }
  0xfd   : > { %v792_v5 = vcombine.high %v790_v62, %v790_v62  ;;  %v2530_v6 = vrot.slane %v791_v63, 9  ;;  %v2531_v7 = vrot.slane %v790_v62, 9  ;;  %v1806_v8 = vmax.f32 %v783_v53, %v2529_v0 }
  0xfe   : > { %v1062_v9 = vrot.slane %v1048_v1, %v2953_v51  ;;  %v1063_v10 = vcombine.high %v1055_v2, %v1055_v2  ;;  %v2593_v11 = vrot.slane %v1055_v2, 9  ;;  %v827_v41 = vcombine.high %v683_v3, %v683_v3 }
  0xff   : > { %v2532_v17 = vrot.slane %v792_v5, 9  ;;  %v1807_v18 = vmax.f32 %v791_v63, %v2530_v6  ;;  %v1808_v20 = vmax.f32 %v790_v62, %v2531_v7  ;;  %v1926_v22 = vmax.f32 %v2992_v54, %v1806_v8 }
 0x100   : > { %v1064_v24 = vcombine.high %v1062_v9, %v1062_v9  ;;  %v2594_v29 = vrot.slane %v1063_v10, 9  ;;  %v2595_v34 = vrot.slane %v1062_v9, 9  ;;  %v1870_v27 = vmax.f32 %v1055_v2, %v2593_v11 }
 0x101   : > { %v1809_v19 = vmax.f32 %v792_v5, %v2532_v17  ;;  %v1927_v28 = vmax.f32 %v2996_v12, %v1807_v18  ;;  %v1928_v30 = vmax.f32 %v2998_v13, %v1808_v20  ;;  %v2057_v46 = vrot.slane %v1926_v22, %v2969_v21 }
 0x102   : > { %v2596_v42 = vrot.slane %v1064_v24, 9  ;;  %v1871_v39 = vmax.f32 %v1063_v10, %v2594_v29  ;;  %v1872_v43 = vmax.f32 %v1062_v9, %v2595_v34  ;;  %v1958_v23 = vmax.f32 %v3002_v16, %v1870_v27 }
 0x103   : > { %v1929_v54 = vmax.f32 %v3000_v14, %v1809_v19  ;;  %v2061_v38 = vrot.slane %v1927_v28, %v2969_v21  ;;  %v2065_v31 = vrot.slane %v1928_v30, %v2969_v21  ;;  %v834_v35 = vrot.slane %v683_v3, %v2953_v51 }
 0x104   : > { %v1873_v32 = vmax.f32 %v1064_v24, %v2596_v42  ;;  %v1959_v12 = vmax.f32 %v3004_v26, %v1871_v39  ;;  %v1960_v13 = vmax.f32 %v3008_v37, %v1872_v43  ;;  %v2185_v16 = vrot.slane %v1958_v23, %v2969_v21  ;;  %v2711_v37 = vpop.f32.mrf.mxu0 }
 0x105   : > { %v2069_v36 = vrot.slane %v1929_v54, %v2969_v21  ;;  %v2311_v52 = vsel %vm2310_vm2, %v2061_v38, %v2057_v46  ;;  %v841_v14 = vrot.slane %v827_v41, %v2953_v51  ;;  %v2213_v57 = vrot.slane %v1965_v58, %v2969_v21 }
 0x106   : > { %v2313_v53 = vsel %vm2312_vm3, %v2065_v31, %v2311_v52  ;;  %v1961_v55 = vmax.f32 %v3022_v47, %v1873_v32  ;;  %v2189_v56 = vrot.slane %v1959_v12, %v2969_v21  ;;  %v2193_v26 = vrot.slane %v1960_v13, %v2969_v21  ;;  %v2735_v31 = vpop.f32.mrf.mxu1  ;;  %v471_v52 = vpop.f32.mrf.mxu0 }
 0x107   : > { %v2315_v61 = vsel %vm2314_vm4, %v2069_v36, %v2313_v53  ;;  %v1099_v62 = vcombine.high %v699_v15, %v699_v15  ;;  %v650_v63 = vadd.f32 %v2948_v44, %v611_v45  ;;  %v666_v47 = vadd.f32 %v2948_v44, %v627_v4 }
 0x108   : > { %v2317_v0 = vsel %vm2316_vm5, %v3025_v25, %v2315_v61  ;;  %v2197_v1 = vrot.slane %v1961_v55, %v2969_v21  ;;  %v2345_v2 = vsel %vm2310_vm2, %v2189_v56, %v2185_v16  ;;  %v842_v45 = vcombine.high %v834_v35, %v834_v35 }
 0x109   : > { %v2319_v58 = vsel %vm2318_vm6, %v3029_v48, %v2317_v0  ;;  %v2346_v3 = vsel %vm2312_vm3, %v2193_v26, %v2345_v2  ;;  %v614_v25 = vmul.f32 %v2711_v37, %v2943_v40  ;;  %v843_v4 = vcombine.high %v841_v14, %v841_v14  ;;  %v551_v0 = vpop.f32.mrf.mxu1 }
 0x10a   : > { %v2321_v5 = vsel %vm2320_vm7, %v3032_v49, %v2319_v58  ;;  %v2347_v6 = vsel %vm2314_vm4, %v2197_v1, %v2346_v3  ;;  %v1106_v7 = vrot.slane %v699_v15, %v2953_v51  ;;  %v1113_v48 = vrot.slane %v1099_v62, %v2953_v51 }
 0x10b   : > { %v2323_v8 = vsel %vm2322_vm8, %v3039_v50, %v2321_v5  ;;  %v2348_v9 = vsel %vm2316_vm5, %v3035_v33, %v2347_v6  ;;  %v682_v10 = vmax.f32 %v650_v63, 0.0  ;;  %v2541_v11 = vrot.slane %v834_v35, 9 }
 0x10c   : > { %2382 = vst.msk [vmem:[%s3087_s14] sm:$0xff] %vm2381_vm9, %v2323_v8  ;;  %v2349_v49 = vsel %vm2318_vm6, %v3045_v59, %v2348_v9  ;;  %v1114_v17 = vcombine.high %v1106_v7, %v1106_v7  ;;  %v698_v18 = vmax.f32 %v666_v47, 0.0  ;;  %v2542_v20 = vrot.slane %v842_v45, 9  ;;  %v2714_v9 = vpop.f32.mrf.mxu0 }
 0x10d   : > { %v2350_v15 = vsel %vm2320_vm7, %v3048_v60, %v2349_v49  ;;  %v1115_v50 = vcombine.high %v1113_v48, %v1113_v48  ;;  %v810_v22 = vcombine.high %v682_v10, %v682_v10  ;;  %v2543_v24 = vrot.slane %v841_v14, 9 }
 0x10e   : > { %v2351_v33 = vsel %vm2322_vm8, %v2213_v57, %v2350_v15  ;;  %v2544_v29 = vrot.slane %v843_v4, 9  ;;  %v817_v34 = vrot.slane %v682_v10, %v2953_v51  ;;  %v2605_v27 = vrot.slane %v1106_v7, 9 }
 0x10f   : > { %2386 = vst.msk [vmem:[%s3087_s14 + $0x20] sm:$0xff] %vm2381_vm9, %v2351_v33  ;;  %v824_v59 = vrot.slane %v810_v22, %v2953_v51  ;;  %v1082_v19 = vcombine.high %v698_v18, %v698_v18  ;;  %v2606_v28 = vrot.slane %v1114_v17, 9  ;;  %v2607_v30 = vrot.slane %v1113_v48, 9 }
 0x110   : > { %v2608_v41 = vrot.slane %v1115_v50, 9  ;;  %v653_v60 = vadd.f32 %v2948_v44, %v614_v25  ;;  %v825_v42 = vcombine.high %v817_v34, %v817_v34  ;;  %v2537_v39 = vrot.slane %v817_v34, 9 }
 0x111   : > { %v1089_v43 = vrot.slane %v698_v18, %v2953_v51  ;;  %v3115_v23 = vmax.f32 %v834_v35, %v2541_v11  ;;  %v3117_v54 = vmax.f32 %v842_v45, %v2542_v20  ;;  %v3119_v46 = vmax.f32 %v841_v14, %v2543_v24 }
 0x112   : > { %v3121_v38 = vmax.f32 %v843_v4, %v2544_v29  ;;  %v3123_v32 = vmax.f32 %v1106_v7, %v2605_v27  ;;  %v826_v12 = vcombine.high %v824_v59, %v824_v59  ;;  %v2539_v13 = vrot.slane %v824_v59, 9 }
 0x113   : > { %v1096_v36 = vrot.slane %v1082_v19, %v2953_v51  ;;  %v3126_v16 = vmax.f32 %v1114_v17, %v2606_v28  ;;  %v3128_v53 = vmax.f32 %v1113_v48, %v2607_v30  ;;  %v3130_v35 = vmax.f32 %v1115_v50, %v2608_v41  ;;  %v2738_v19 = vpop.f32.mrf.mxu1 }
 0x114   : > { %v685_v55 = vmax.f32 %v653_v60, 0.0  ;;  %v2538_v56 = vrot.slane %v825_v42, 9  ;;  %v3132_v14 = vmax.f32 %v817_v34, %v2537_v39  ;;  %v1097_v26 = vcombine.high %v1089_v43, %v1089_v43 }
 0x115   : > { %v630_v37 = vmul.f32 %v2735_v31, %v2943_v40  ;;  %v2601_v57 = vrot.slane %v1089_v43, 9  ;;  %v613_v63 = vmul.f32 %v2943_v40, %v471_v52  ;;  %v2540_v1 = vrot.slane %v826_v12, 9 }
 0x116   : > { %v861_v61 = vcombine.high %v685_v55, %v685_v55  ;;  %v868_v62 = vrot.slane %v685_v55, %v2953_v51  ;;  %v3137_v2 = vmax.f32 %v824_v59, %v2539_v13  ;;  %v1098_v47 = vcombine.high %v1096_v36, %v1096_v36 }
 0x117   : > { %v669_v58 = vadd.f32 %v2948_v44, %v630_v37  ;;  %v652_v5 = vadd.f32 %v2948_v44, %v613_v63  ;;  %v3142_v6 = vmax.f32 %v825_v42, %v2538_v56  ;;  %v2603_v4 = vrot.slane %v1096_v36, 9 }
 0x118   : > { %v875_v3 = vrot.slane %v861_v61, %v2953_v51  ;;  %v876_v45 = vcombine.high %v868_v62, %v868_v62  ;;  %v2549_v25 = vrot.slane %v868_v62, 9  ;;  %v629_v8 = vmul.f32 %v2943_v40, %v551_v0 }
 0x119   : > { %v701_v7 = vmax.f32 %v669_v58, 0.0  ;;  %v2602_v17 = vrot.slane %v1097_v26, 9  ;;  %v684_v20 = vmax.f32 %v652_v5, 0.0  ;;  %v2604_v50 = vrot.slane %v1098_v47, 9 }
 0x11a   : > { %v877_v48 = vcombine.high %v875_v3, %v875_v3  ;;  %v2550_v10 = vrot.slane %v876_v45, 9  ;;  %v2551_v49 = vrot.slane %v875_v3, 9  ;;  %v1826_v11 = vmax.f32 %v868_v62, %v2549_v25 }
 0x11b   : > { %v1133_v18 = vcombine.high %v701_v7, %v701_v7  ;;  %v1140_v15 = vrot.slane %v701_v7, %v2953_v51  ;;  %v3146_v22 = vmax.f32 %v1089_v43, %v2601_v57  ;;  %v616_v24 = vmul.f32 %v2714_v9, %v2943_v40 }
 0x11c   : > { %v2552_v33 = vrot.slane %v877_v48, 9  ;;  %v1827_v29 = vmax.f32 %v876_v45, %v2550_v10  ;;  %v1828_v34 = vmax.f32 %v875_v3, %v2551_v49  ;;  %v668_v59 = vadd.f32 %v2948_v44, %v629_v8 }
 0x11d   : > { %v1147_v27 = vrot.slane %v1133_v18, %v2953_v51  ;;  %v1817_v28 = vmax.f32 %v826_v12, %v2540_v1  ;;  %v3151_v30 = vmax.f32 %v1096_v36, %v2603_v4  ;;  %v1938_v41 = vmax.f32 %v3115_v23, %v1826_v11 }
 0x11e   : > { %v844_v60 = vcombine.high %v684_v20, %v684_v20  ;;  %v3154_v42 = vmax.f32 %v1097_v26, %v2602_v17  ;;  %v1829_v39 = vmax.f32 %v877_v48, %v2552_v33  ;;  %v1148_v43 = vcombine.high %v1140_v15, %v1140_v15 }
 0x11f   : > { %v2613_v31 = vrot.slane %v1140_v15, 9  ;;  %v3156_v13 = vmax.f32 %v1098_v47, %v2604_v50  ;;  %v851_v52 = vrot.slane %v684_v20, %v2953_v51  ;;  %v655_v55 = vadd.f32 %v2948_v44, %v616_v24 }
 0x120   : > { %v3161_v56 = vmul.f32 %v2738_v19, %v2943_v40  ;;  %v1939_v12 = vmax.f32 %v3117_v54, %v1827_v29  ;;  %v1940_v36 = vmax.f32 %v3119_v46, %v1828_v34  ;;  %v1149_v23 = vcombine.high %v1147_v27, %v1147_v27 }
 0x121   : > { %v700_v37 = vmax.f32 %v668_v59, 0.0  ;;  %v2105_v26 = vrot.slane %v1938_v41, %v2969_v21  ;;  %v858_v57 = vrot.slane %v844_v60, %v2953_v51  ;;  %v859_v61 = vcombine.high %v851_v52, %v851_v52 }
 0x122   : > { %v2545_v62 = vrot.slane %v851_v52, 9  ;;  %v1941_v63 = vmax.f32 %v3121_v38, %v1829_v39  ;;  %v2614_v0 = vrot.slane %v1148_v43, 9  ;;  %v2615_v1 = vrot.slane %v1147_v27, 9 }
 0x123   : > { %v1890_v47 = vmax.f32 %v1140_v15, %v2613_v31  ;;  %v860_v58 = vcombine.high %v858_v57, %v858_v57  ;;  %v2546_v3 = vrot.slane %v859_v61, 9  ;;  %v2547_v45 = vrot.slane %v858_v57, 9 }
 0x124   : > { %v1822_v25 = vmax.f32 %v851_v52, %v2545_v62  ;;  %v2109_v54 = vrot.slane %v1939_v12, %v2969_v21  ;;  %v2113_v46 = vrot.slane %v1940_v36, %v2969_v21  ;;  %v2616_v5 = vrot.slane %v1149_v23, 9 }
 0x125   : > { %v1116_v4 = vcombine.high %v700_v37, %v700_v37  ;;  %v2548_v7 = vrot.slane %v860_v58, 9  ;;  %v1823_v8 = vmax.f32 %v859_v61, %v2546_v3  ;;  %v1824_v9 = vmax.f32 %v858_v57, %v2547_v45 }
 0x126   : > { %v1934_v48 = vmax.f32 %v3132_v14, %v1822_v25  ;;  %v1891_v10 = vmax.f32 %v1148_v43, %v2614_v0  ;;  %v1892_v38 = vmax.f32 %v1147_v27, %v2615_v1  ;;  %v1123_v49 = vrot.slane %v700_v37, %v2953_v51 }
 0x127   : > { %v1130_v11 = vrot.slane %v1116_v4, %v2953_v51  ;;  %v1825_v17 = vmax.f32 %v860_v58, %v2548_v7  ;;  %v1935_v18 = vmax.f32 %v3142_v6, %v1823_v8  ;;  %v1936_v15 = vmax.f32 %v3137_v2, %v1824_v9 }
 0x128   : > { %v687_v20 = vmax.f32 %v655_v55, 0.0  ;;  %v1131_v50 = vcombine.high %v1123_v49, %v1123_v49  ;;  %v2609_v24 = vrot.slane %v1123_v49, 9  ;;  %v2089_v59 = vrot.slane %v1934_v48, %v2969_v21 }
 0x129   : > { %v1132_v33 = vcombine.high %v1130_v11, %v1130_v11  ;;  %v2611_v29 = vrot.slane %v1130_v11, 9  ;;  %v1937_v34 = vmax.f32 %v1817_v28, %v1825_v17  ;;  %v2093_v14 = vrot.slane %v1935_v18, %v2969_v21 }
 0x12a   : > { %v2097_v27 = vrot.slane %v1936_v15, %v2969_v21  ;;  %v2610_v19 = vrot.slane %v1131_v50, 9  ;;  %v1886_v60 = vmax.f32 %v1123_v49, %v2609_v24  ;;  %v1893_v43 = vmax.f32 %v1149_v23, %v2616_v5  ;;  %v481_v23 = vpop.f32.mrf.mxu0 }
 0x12b   : > { %v2612_v41 = vrot.slane %v1132_v33, 9  ;;  %v1888_v39 = vmax.f32 %v1130_v11, %v2611_v29  ;;  %v1970_v6 = vmax.f32 %v3123_v32, %v1890_v47  ;;  %v2101_v2 = vrot.slane %v1937_v34, %v2969_v21 }
 0x12c   : > { %v2324_v31 = vsel %vm2310_vm2, %v2093_v14, %v2089_v59  ;;  %v1887_v28 = vmax.f32 %v1131_v50, %v2610_v19  ;;  %v1966_v12 = vmax.f32 %v3146_v22, %v1886_v60  ;;  %v2117_v36 = vrot.slane %v1941_v63, %v2969_v21  ;;  %v2717_v25 = vpop.f32.mrf.mxu0 }
 0x12d   : > { %v2325_v52 = vsel %vm2312_vm3, %v2097_v27, %v2324_v31  ;;  %v1889_v55 = vmax.f32 %v1132_v33, %v2612_v41  ;;  %v1968_v57 = vmax.f32 %v3151_v30, %v1888_v39  ;;  %v895_v61 = vcombine.high %v687_v20, %v687_v20 }
 0x12e   : > { %v2326_v37 = vsel %vm2314_vm4, %v2101_v2, %v2325_v52  ;;  %v1971_v32 = vmax.f32 %v3126_v16, %v1891_v10  ;;  %v1967_v0 = vmax.f32 %v3154_v42, %v1887_v28  ;;  %v1972_v47 = vmax.f32 %v3128_v53, %v1892_v38  ;;  %v561_v42 = vpop.f32.mrf.mxu1 }
 0x12f   : > { %v2327_v62 = vsel %vm2316_vm5, %v2105_v26, %v2326_v37  ;;  %v1969_v1 = vmax.f32 %v3156_v13, %v1889_v55  ;;  %v1973_v22 = vmax.f32 %v3130_v35, %v1893_v43  ;;  %v2225_v58 = vrot.slane %v1968_v57, %v2969_v21 }
 0x130   : > { %v2328_v63 = vsel %vm2318_vm6, %v2109_v54, %v2327_v62  ;;  %v2217_v3 = vrot.slane %v1966_v12, %v2969_v21  ;;  %v2221_v16 = vrot.slane %v1967_v0, %v2969_v21  ;;  %v2233_v13 = vrot.slane %v1970_v6, %v2969_v21  ;;  %v2741_v29 = vpop.f32.mrf.mxu1 }
 0x131   : > { %v2329_v30 = vsel %vm2320_vm7, %v2113_v46, %v2328_v63  ;;  %v2229_v26 = vrot.slane %v1969_v1, %v2969_v21  ;;  %v902_v53 = vrot.slane %v687_v20, %v2953_v51  ;;  %v909_v35 = vrot.slane %v895_v61, %v2953_v51  ;;  %v491_v61 = vpop.f32.mrf.mxu0 }
 0x132   : > { %v2330_v45 = vsel %vm2322_vm8, %v2117_v36, %v2329_v30  ;;  %v2237_v54 = vrot.slane %v1971_v32, %v2969_v21  ;;  %v2352_v46 = vsel %vm2310_vm2, %v2221_v16, %v2217_v3  ;;  %v671_v5 = vadd.f32 %v2948_v44, %v3161_v56 }
 0x133   : > { %2383 = vst.msk [vmem:[%s3087_s14 + $0x8] sm:$0xff] %vm2381_vm9, %v2330_v45  ;;  %v615_v4 = vmul.f32 %v2943_v40, %v481_v23  ;;  %v2241_v7 = vrot.slane %v1972_v47, %v2969_v21  ;;  %v2245_v8 = vrot.slane %v1973_v22, %v2969_v21  ;;  %v2353_v9 = vsel %vm2312_vm3, %v2225_v58, %v2352_v46 }
 0x134   : > { %v631_v48 = vmul.f32 %v2943_v40, %v561_v42  ;;  %v2354_v10 = vsel %vm2314_vm4, %v2229_v26, %v2353_v9  ;;  %v703_v38 = vmax.f32 %v671_v5, 0.0  ;;  %v618_v11 = vmul.f32 %v2717_v25, %v2943_v40 }
 0x135   : > { %v654_v49 = vadd.f32 %v2948_v44, %v615_v4  ;;  %v2355_v17 = vsel %vm2316_vm5, %v2233_v13, %v2354_v10  ;;  %v910_v56 = vcombine.high %v902_v53, %v902_v53  ;;  %v911_v18 = vcombine.high %v909_v35, %v909_v35 }
 0x136   : > { %v670_v15 = vadd.f32 %v2948_v44, %v631_v48  ;;  %v2356_v20 = vsel %vm2318_vm6, %v2237_v54, %v2355_v17  ;;  %v1167_v50 = vcombine.high %v703_v38, %v703_v38  ;;  %v1174_v33 = vrot.slane %v703_v38, %v2953_v51 }
 0x137   : > { %v686_v24 = vmax.f32 %v654_v49, 0.0  ;;  %v2357_v34 = vsel %vm2320_vm7, %v2241_v7, %v2356_v20  ;;  %v2557_v59 = vrot.slane %v902_v53, 9  ;;  %v657_v60 = vadd.f32 %v2948_v44, %v618_v11 }
 0x138   : > { %v702_v14 = vmax.f32 %v670_v15, 0.0  ;;  %v2358_v27 = vsel %vm2322_vm8, %v2245_v8, %v2357_v34  ;;  %v1181_v19 = vrot.slane %v1167_v50, %v2953_v51  ;;  %v1182_v41 = vcombine.high %v1174_v33, %v1174_v33 }
 0x139   : > { %2387 = vst.msk [vmem:[%s3087_s14 + $0x28] sm:$0xff] %vm2381_vm9, %v2358_v27  ;;  %v2558_v39 = vrot.slane %v910_v56, 9  ;;  %v878_v43 = vcombine.high %v686_v24, %v686_v24  ;;  %v885_v6 = vrot.slane %v686_v24, %v2953_v51  ;;  %v634_v2 = vmul.f32 %v2741_v29, %v2943_v40 }
 0x13a   : > { %v2559_v31 = vrot.slane %v909_v35, 9  ;;  %v2560_v52 = vrot.slane %v911_v18, 9  ;;  %v1183_v28 = vcombine.high %v1181_v19, %v1181_v19  ;;  %v1150_v55 = vcombine.high %v702_v14, %v702_v14 }
 0x13b   : > { %v2621_v12 = vrot.slane %v1174_v33, 9  ;;  %v2622_v36 = vrot.slane %v1182_v41, 9  ;;  %v2623_v37 = vrot.slane %v1181_v19, 9  ;;  %v1157_v57 = vrot.slane %v702_v14, %v2953_v51 }
 0x13c   : > { %v3229_v23 = vmax.f32 %v902_v53, %v2557_v59  ;;  %v892_v32 = vrot.slane %v878_v43, %v2953_v51  ;;  %v893_v62 = vcombine.high %v885_v6, %v885_v6  ;;  %v689_v0 = vmax.f32 %v657_v60, 0.0 }
 0x13d   : > { %v3232_v1 = vmax.f32 %v910_v56, %v2558_v39  ;;  %v2624_v47 = vrot.slane %v1183_v28, 9  ;;  %v2553_v22 = vrot.slane %v885_v6, 9  ;;  %v673_v63 = vadd.f32 %v2948_v44, %v634_v2  ;;  %v571_v56 = vpop.f32.mrf.mxu1 }
 0x13e   : > { %v3235_v58 = vmax.f32 %v909_v35, %v2559_v31  ;;  %v3237_v30 = vmax.f32 %v911_v18, %v2560_v52  ;;  %v1164_v3 = vrot.slane %v1150_v55, %v2953_v51  ;;  %v617_v16 = vmul.f32 %v2943_v40, %v491_v61 }
 0x13f   : > { %v3241_v26 = vmax.f32 %v1174_v33, %v2621_v12  ;;  %v3243_v42 = vmax.f32 %v1182_v41, %v2622_v36  ;;  %v3245_v13 = vmax.f32 %v1181_v19, %v2623_v37  ;;  %v1165_v45 = vcombine.high %v1157_v57, %v1157_v57 }
 0x140   : > { %v894_v53 = vcombine.high %v892_v32, %v892_v32  ;;  %v2554_v25 = vrot.slane %v893_v62, 9  ;;  %v2555_v54 = vrot.slane %v892_v32, 9  ;;  %v929_v46 = vcombine.high %v689_v0, %v689_v0 }
 0x141   : > { %v3247_v5 = vmax.f32 %v1183_v28, %v2624_v47  ;;  %v3249_v35 = vmax.f32 %v885_v6, %v2553_v22  ;;  %v936_v4 = vrot.slane %v689_v0, %v2953_v51  ;;  %v705_v7 = vmax.f32 %v673_v63, 0.0 }
 0x142   : > { %v1166_v8 = vcombine.high %v1164_v3, %v1164_v3  ;;  %v2617_v9 = vrot.slane %v1157_v57, 9  ;;  %v943_v48 = vrot.slane %v929_v46, %v2953_v51  ;;  %v656_v10 = vadd.f32 %v2948_v44, %v617_v16 }
 0x143   : > { %v944_v38 = vcombine.high %v936_v4, %v936_v4  ;;  %v2565_v49 = vrot.slane %v936_v4, 9  ;;  %v1201_v11 = vcombine.high %v705_v7, %v705_v7  ;;  %v1208_v17 = vrot.slane %v705_v7, %v2953_v51 }
 0x144   : > { %v2618_v18 = vrot.slane %v1165_v45, 9  ;;  %v945_v15 = vcombine.high %v943_v48, %v943_v48  ;;  %v2567_v20 = vrot.slane %v943_v48, 9  ;;  %v688_v50 = vmax.f32 %v656_v10, 0.0 }
 0x145   : > { %v2566_v33 = vrot.slane %v944_v38, 9  ;;  %v1842_v24 = vmax.f32 %v936_v4, %v2565_v49  ;;  %v1215_v29 = vrot.slane %v1201_v11, %v2953_v51  ;;  %v1216_v34 = vcombine.high %v1208_v17, %v1208_v17 }
 0x146   : > { %v2556_v59 = vrot.slane %v894_v53, 9  ;;  %v2619_v14 = vrot.slane %v1164_v3, 9  ;;  %v2568_v27 = vrot.slane %v945_v15, 9  ;;  %v633_v19 = vmul.f32 %v2943_v40, %v571_v56 }
 0x147   : > { %v1831_v41 = vmax.f32 %v893_v62, %v2554_v25  ;;  %v1832_v60 = vmax.f32 %v892_v32, %v2555_v54  ;;  %v2620_v39 = vrot.slane %v1166_v8, 9  ;;  %v1844_v43 = vmax.f32 %v943_v48, %v2567_v20 }
 0x148   : > { %v1843_v6 = vmax.f32 %v944_v38, %v2566_v33  ;;  %v1946_v2 = vmax.f32 %v3229_v23, %v1842_v24  ;;  %v2629_v31 = vrot.slane %v1208_v17, 9  ;;  %v912_v52 = vcombine.high %v688_v50, %v688_v50 }
 0x149   : > { %v3258_v28 = vmax.f32 %v1157_v57, %v2617_v9  ;;  %v3260_v55 = vmax.f32 %v1165_v45, %v2618_v18  ;;  %v1217_v12 = vcombine.high %v1215_v29, %v1215_v29  ;;  %v2630_v36 = vrot.slane %v1216_v34, 9  ;;  %v2720_v45 = vpop.f32.mrf.mxu0 }
 0x14a   : > { %v1833_v37 = vmax.f32 %v894_v53, %v2556_v59  ;;  %v3262_v61 = vmax.f32 %v1164_v3, %v2619_v14  ;;  %v3264_v0 = vmax.f32 %v945_v15, %v2568_v27  ;;  %v672_v32 = vadd.f32 %v2948_v44, %v633_v19  ;;  %v3291_v59 = vld [vmem:[%s3465_s3] ss:$0 sm:$0xff] }
 0x14b   : > { %v3267_v62 = vmax.f32 %v1166_v8, %v2620_v39  ;;  %v1948_v47 = vmax.f32 %v3235_v58, %v1844_v43  ;;  %v2631_v23 = vrot.slane %v1215_v29, 9  ;;  %v919_v22 = vrot.slane %v688_v50, %v2953_v51 }
 0x14c   : > { %v1947_v57 = vmax.f32 %v3232_v1, %v1843_v6  ;;  %v2137_v63 = vrot.slane %v1946_v2, %v2969_v21  ;;  %v3273_v16 = vmax.f32 %v1208_v17, %v2629_v31  ;;  %v926_v3 = vrot.slane %v912_v52, %v2953_v51  ;;  %v2744_v52 = vpop.f32.mrf.mxu1 }
 0x14d   : > { %v2632_v53 = vrot.slane %v1217_v12, 9  ;;  %v3276_v25 = vmax.f32 %v1216_v34, %v2630_v36  ;;  %v927_v44 = vcombine.high %v919_v22, %v919_v22  ;;  %v2561_v54 = vrot.slane %v919_v22, 9 }
 0x14e   : > { %v1949_v58 = vmax.f32 %v3237_v30, %v3264_v0  ;;  %v928_v46 = vcombine.high %v926_v3, %v926_v3  ;;  %v2563_v4 = vrot.slane %v926_v3, 9  ;;  %v704_v7 = vmax.f32 %v672_v32, 0.0 }
 0x14f   : > { %v2145_v1 = vrot.slane %v1948_v47, %v2969_v21  ;;  %v2562_v8 = vrot.slane %v927_v44, 9  ;;  %v1838_v9 = vmax.f32 %v919_v22, %v2561_v54  ;;  %v620_v48 = vmul.f32 %v2720_v45, %v2943_v40 }
 0x150   : > { %v2564_v10 = vrot.slane %v928_v46, 9  ;;  %v1840_v38 = vmax.f32 %v926_v3, %v2563_v4  ;;  %v1184_v49 = vcombine.high %v704_v7, %v704_v7  ;;  %v1191_v11 = vrot.slane %v704_v7, %v2953_v51 }
 0x151   : > { %v1908_v17 = vmax.f32 %v1215_v29, %v2631_v23  ;;  %v1978_v56 = vmax.f32 %v3241_v26, %v3273_v16  ;;  %v1839_v18 = vmax.f32 %v927_v44, %v2562_v8  ;;  %v1942_v30 = vmax.f32 %v3249_v35, %v1838_v9  ;;  %v581_v44 = vpop.f32.mrf.mxu1 }
 0x152   : > { %v1841_v15 = vmax.f32 %v928_v46, %v2564_v10  ;;  %v1944_v20 = vmax.f32 %v1832_v60, %v1840_v38  ;;  %v1198_v50 = vrot.slane %v1184_v49, %v2953_v51  ;;  %v1199_v33 = vcombine.high %v1191_v11, %v1191_v11 }
 0x153   : > { %v2141_v24 = vrot.slane %v1947_v57, %v2969_v21  ;;  %v1943_v40 = vmax.f32 %v1831_v41, %v1839_v18  ;;  %v2625_v34 = vrot.slane %v1191_v11, 9  ;;  %v659_v29 = vadd.f32 %v3291_v59, %v620_v48 }
 0x154   : > { %v1945_v26 = vmax.f32 %v1833_v37, %v1841_v15  ;;  %v2129_v14 = vrot.slane %v1944_v20, %v2969_v21  ;;  %v1200_v35 = vcombine.high %v1198_v50, %v1198_v50  ;;  %v2626_v27 = vrot.slane %v1199_v33, 9 }
 0x155   : > { %v2121_v19 = vrot.slane %v1942_v30, %v2969_v21  ;;  %v2125_v60 = vrot.slane %v1943_v40, %v2969_v21  ;;  %v2627_v39 = vrot.slane %v1198_v50, 9  ;;  %v1902_v43 = vmax.f32 %v1191_v11, %v2625_v34 }
 0x156   : > { %v1909_v41 = vmax.f32 %v1217_v12, %v2632_v53  ;;  %v2133_v6 = vrot.slane %v1945_v26, %v2969_v21  ;;  %v2628_v2 = vrot.slane %v1200_v35, 9  ;;  %v1903_v31 = vmax.f32 %v1199_v33, %v2626_v27 }
 0x157   : > { %v1979_v36 = vmax.f32 %v3243_v42, %v3276_v25  ;;  %v2331_v37 = vsel %vm2310_vm2, %v2125_v60, %v2121_v19  ;;  %v1904_v0 = vmax.f32 %v1198_v50, %v2627_v39  ;;  %v1974_v32 = vmax.f32 %v3258_v28, %v1902_v43  ;;  %v3310_v42 = vld [vmem:[%s3464_s2] ss:$0 sm:$0xff]  ;;  %v501_v28 = vpop.f32.mrf.mxu0 }
 0x158   : > { %v2332_v47 = vsel %vm2312_vm3, %v2129_v14, %v2331_v37  ;;  %v1905_v23 = vmax.f32 %v1200_v35, %v2628_v2  ;;  %v1975_v22 = vmax.f32 %v3260_v55, %v1903_v31  ;;  %v691_v57 = vmax.f32 %v659_v29, 0.0 }
 0x159   : > { %v1980_v12 = vmax.f32 %v3245_v13, %v1908_v17  ;;  %v2333_v16 = vsel %vm2314_vm4, %v2133_v6, %v2332_v47  ;;  %v1976_v3 = vmax.f32 %v3262_v61, %v1904_v0  ;;  %v636_v45 = vmul.f32 %v3310_v42, %v2744_v52  ;;  %v2747_v17 = vpop.f32.mrf.mxu1 }
 0x15a   : > { %v2334_v53 = vsel %vm2316_vm5, %v2137_v63, %v2333_v16  ;;  %v1977_v25 = vmax.f32 %v3267_v62, %v1905_v23  ;;  %v2249_v55 = vrot.slane %v1974_v32, %v2969_v21  ;;  %v2253_v13 = vrot.slane %v1975_v22, %v2969_v21 }
 0x15b   : > { %v2149_v61 = vrot.slane %v1949_v58, %v2969_v21  ;;  %v1981_v54 = vmax.f32 %v3247_v5, %v1909_v41  ;;  %v2335_v46 = vsel %vm2318_vm6, %v2141_v24, %v2334_v53  ;;  %v2257_v4 = vrot.slane %v1976_v3, %v2969_v21  ;;  %v2723_v5 = vpop.f32.mrf.mxu0 }
 0x15c   : > { %v2336_v7 = vsel %vm2320_vm7, %v2145_v1, %v2335_v46  ;;  %v2261_v63 = vrot.slane %v1977_v25, %v2969_v21  ;;  %v2359_v62 = vsel %vm2310_vm2, %v2253_v13, %v2249_v55  ;;  %v963_v8 = vcombine.high %v691_v57, %v691_v57 }
 0x15d   : > { %v2265_v9 = vrot.slane %v1978_v56, %v2969_v21  ;;  %v2269_v48 = vrot.slane %v1979_v36, %v2969_v21  ;;  %v2337_v10 = vsel %vm2322_vm8, %v2149_v61, %v2336_v7  ;;  %v2360_v58 = vsel %vm2312_vm3, %v2257_v4, %v2359_v62  ;;  %v511_v0 = vpop.f32.mrf.mxu0 }
 0x15e   : > { %v2273_v38 = vrot.slane %v1980_v12, %v2969_v21  ;;  %2384 = vst.msk [vmem:[%s3087_s14 + $0x10] sm:$0xff] %vm2381_vm9, %v2337_v10  ;;  %v2361_v1 = vsel %vm2314_vm4, %v2261_v63, %v2360_v58  ;;  %v970_v49 = vrot.slane %v691_v57, %v2953_v51  ;;  %v675_v11 = vadd.f32 %v3291_v59, %v636_v45 }
 0x15f   : > { %v2277_v56 = vrot.slane %v1981_v54, %v2969_v21  ;;  %v2362_v18 = vsel %vm2316_vm5, %v2265_v9, %v2361_v1  ;;  %v619_v30 = vmul.f32 %v3310_v42, %v501_v28  ;;  %v635_v15 = vmul.f32 %v3310_v42, %v581_v44 }
 0x160   : > { %v2363_v20 = vsel %vm2318_vm6, %v2269_v48, %v2362_v18  ;;  %v977_v50 = vrot.slane %v963_v8, %v2953_v51  ;;  %v707_v33 = vmax.f32 %v675_v11, 0.0  ;;  %v622_v24 = vmul.f32 %v3310_v42, %v2723_v5 }
 0x161   : > { %v2364_v40 = vsel %vm2320_vm7, %v2273_v38, %v2363_v20  ;;  %v658_v34 = vadd.f32 %v3291_v59, %v619_v30  ;;  %v674_v29 = vadd.f32 %v3291_v59, %v635_v15  ;;  %v638_v26 = vmul.f32 %v3310_v42, %v2747_v17 }
 0x162   : > { %v2365_v14 = vsel %vm2322_vm8, %v2277_v56, %v2364_v40  ;;  %v978_v35 = vcombine.high %v970_v49, %v970_v49  ;;  %v1235_v27 = vcombine.high %v707_v33, %v707_v33  ;;  %v1242_v19 = vrot.slane %v707_v33, %v2953_v51 }
 0x163   : > { %2388 = vst.msk [vmem:[%s3087_s14 + $0x30] sm:$0xff] %vm2381_vm9, %v2365_v14  ;;  %v690_v60 = vmax.f32 %v658_v34, 0.0  ;;  %v706_v39 = vmax.f32 %v674_v29, 0.0  ;;  %v979_v43 = vcombine.high %v977_v50, %v977_v50  ;;  %v661_v6 = vadd.f32 %v3291_v59, %v622_v24  ;;  %v591_v34 = vpop.f32.mrf.mxu1 }
 0x164   : > { %v1249_v41 = vrot.slane %v1235_v27, %v2953_v51  ;;  %v2573_v2 = vrot.slane %v970_v49, 9  ;;  %v677_v31 = vadd.f32 %v3291_v59, %v638_v26  ;;  %v2574_v52 = vrot.slane %v978_v35, 9 }
 0x165   : > { %v946_v36 = vcombine.high %v690_v60, %v690_v60  ;;  %v953_v37 = vrot.slane %v690_v60, %v2953_v51  ;;  %v2575_v32 = vrot.slane %v977_v50, 9  ;;  %v1250_v47 = vcombine.high %v1242_v19, %v1242_v19 }
 0x166   : > { %v1218_v23 = vcombine.high %v706_v39, %v706_v39  ;;  %v2576_v22 = vrot.slane %v979_v43, 9  ;;  %v1251_v57 = vcombine.high %v1249_v41, %v1249_v41  ;;  %v693_v12 = vmax.f32 %v661_v6, 0.0 }
 0x167   : > { %v3353_v16 = vmax.f32 %v970_v49, %v2573_v2  ;;  %v1225_v3 = vrot.slane %v706_v39, %v2953_v51  ;;  %v709_v45 = vmax.f32 %v677_v31, 0.0  ;;  %v621_v28 = vmul.f32 %v3310_v42, %v511_v0 }
 0x168   : > { %v3357_v53 = vmax.f32 %v978_v35, %v2574_v52  ;;  %v2637_v25 = vrot.slane %v1242_v19, 9  ;;  %v960_v55 = vrot.slane %v946_v36, %v2953_v51  ;;  %v961_v13 = vcombine.high %v953_v37, %v953_v37 }
 0x169   : > { %v3360_v44 = vmax.f32 %v977_v50, %v2575_v32  ;;  %v2638_v61 = vrot.slane %v1250_v47, 9  ;;  %v2639_v54 = vrot.slane %v1249_v41, 9  ;;  %v1232_v46 = vrot.slane %v1218_v23, %v2953_v51 }
 0x16a   : > { %v3363_v4 = vmax.f32 %v979_v43, %v2576_v22  ;;  %v2640_v7 = vrot.slane %v1251_v57, 9  ;;  %v2569_v63 = vrot.slane %v953_v37, 9  ;;  %v997_v62 = vcombine.high %v693_v12, %v693_v12 }
 0x16b   : > { %v1233_v8 = vcombine.high %v1225_v3, %v1225_v3  ;;  %v1004_v9 = vrot.slane %v693_v12, %v2953_v51  ;;  %v1269_v48 = vcombine.high %v709_v45, %v709_v45  ;;  %v660_v10 = vadd.f32 %v3291_v59, %v621_v28 }
 0x16c   : > { %v3367_v58 = vmax.f32 %v1242_v19, %v2637_v25  ;;  %v962_v5 = vcombine.high %v960_v55, %v960_v55  ;;  %v2570_v38 = vrot.slane %v961_v13, 9  ;;  %v1011_v1 = vrot.slane %v997_v62, %v2953_v51 }
 0x16d   : > { %v3370_v49 = vmax.f32 %v1250_v47, %v2638_v61  ;;  %v3372_v11 = vmax.f32 %v1249_v41, %v2639_v54  ;;  %v1234_v17 = vcombine.high %v1232_v46, %v1232_v46  ;;  %v1276_v56 = vrot.slane %v709_v45, %v2953_v51 }
 0x16e   : > { %v3375_v18 = vmax.f32 %v1251_v57, %v2640_v7  ;;  %v2571_v30 = vrot.slane %v960_v55, 9  ;;  %v3377_v15 = vmax.f32 %v953_v37, %v2569_v63  ;;  %v1012_v20 = vcombine.high %v1004_v9, %v1004_v9 }
 0x16f   : > { %v2633_v50 = vrot.slane %v1225_v3, 9  ;;  %v2634_v33 = vrot.slane %v1233_v8, 9  ;;  %v2581_v24 = vrot.slane %v1004_v9, 9  ;;  %v1283_v40 = vrot.slane %v1269_v48, %v2953_v51 }
 0x170   : > { %v2572_v29 = vrot.slane %v962_v5, 9  ;;  %v3380_v26 = vmax.f32 %v961_v13, %v2570_v38  ;;  %v2635_v14 = vrot.slane %v1232_v46, 9  ;;  %v1013_v35 = vcombine.high %v1011_v1, %v1011_v1 }
 0x171   : > { %v2636_v27 = vrot.slane %v1234_v17, 9  ;;  %v2583_v19 = vrot.slane %v1011_v1, 9  ;;  %v1284_v60 = vcombine.high %v1276_v56, %v1276_v56  ;;  %v692_v39 = vmax.f32 %v660_v10, 0.0 }
 0x172   : > { %v1848_v43 = vmax.f32 %v960_v55, %v2571_v30  ;;  %v2582_v41 = vrot.slane %v1012_v20, 9  ;;  %v2645_v6 = vrot.slane %v1276_v56, 9  ;;  %v637_v2 = vmul.f32 %v3310_v42, %v591_v34 }
 0x173   : > { %v3383_v31 = vmax.f32 %v1225_v3, %v2633_v50  ;;  %v1858_v52 = vmax.f32 %v1004_v9, %v2581_v24  ;;  %v1285_v36 = vcombine.high %v1283_v40, %v1283_v40  ;;  %v2647_v37 = vrot.slane %v1283_v40, 9 }
 0x174   : > { %v1849_v0 = vmax.f32 %v962_v5, %v2572_v29  ;;  %v3385_v32 = vmax.f32 %v1233_v8, %v2634_v33  ;;  %v3387_v47 = vmax.f32 %v1232_v46, %v2635_v14  ;;  %v2584_v23 = vrot.slane %v1013_v35, 9 }
 0x175   : > { %v3389_v22 = vmax.f32 %v1234_v17, %v2636_v27  ;;  %v3391_v57 = vmax.f32 %v1011_v1, %v2583_v19  ;;  %v2646_v12 = vrot.slane %v1284_v60, 9  ;;  %v980_v45 = vcombine.high %v692_v39, %v692_v39 }
 0x176   : > { %v1859_v28 = vmax.f32 %v1012_v20, %v2582_v41  ;;  %v3393_v25 = vmax.f32 %v1276_v56, %v2645_v6  ;;  %v987_v42 = vrot.slane %v692_v39, %v2953_v51  ;;  %v676_v3 = vadd.f32 %v3291_v59, %v637_v2 }
 0x177   : > { %v1954_v55 = vmax.f32 %v3353_v16, %v1858_v52  ;;  %v2648_v13 = vrot.slane %v1285_v36, 9  ;;  %v3398_v61 = vmax.f32 %v1283_v40, %v2647_v37  ;;  %v994_v54 = vrot.slane %v980_v45, %v2953_v51 }
 0x178   : > { %v1861_v46 = vmax.f32 %v1013_v35, %v2584_v23  ;;  %v995_v7 = vcombine.high %v987_v42, %v987_v42  ;;  %v2577_v63 = vrot.slane %v987_v42, 9  ;;  %v708_v62 = vmax.f32 %v676_v3, 0.0 }
 0x179   : > { %v1956_v8 = vmax.f32 %v3360_v44, %v3391_v57  ;;  %v1923_v9 = vmax.f32 %v1284_v60, %v2646_v12  ;;  %v996_v48 = vcombine.high %v994_v54, %v994_v54  ;;  %v2579_v10 = vrot.slane %v994_v54, 9 }
 0x17a   : > { %v2578_v5 = vrot.slane %v995_v7, 9  ;;  %v1854_v38 = vmax.f32 %v987_v42, %v2577_v63  ;;  %v1252_v59 = vcombine.high %v708_v62, %v708_v62  ;;  %v1259_v16 = vrot.slane %v708_v62, %v2953_v51 }
 0x17b   : > { %v1955_v1 = vmax.f32 %v3357_v53, %v1859_v28  ;;  %v1986_v17 = vmax.f32 %v3367_v58, %v3393_v25  ;;  %v2580_v56 = vrot.slane %v996_v48, 9  ;;  %v1856_v30 = vmax.f32 %v994_v54, %v2579_v10 }
 0x17c   : > { %v1855_v20 = vmax.f32 %v995_v7, %v2578_v5  ;;  %v1950_v50 = vmax.f32 %v3377_v15, %v1854_v38  ;;  %v1266_v44 = vrot.slane %v1252_v59, %v2953_v51  ;;  %v1267_v33 = vcombine.high %v1259_v16, %v1259_v16 }
 0x17d   : > { %v2169_v24 = vrot.slane %v1954_v55, %v2969_v21  ;;  %v1857_v40 = vmax.f32 %v996_v48, %v2580_v56  ;;  %v1952_v34 = vmax.f32 %v1848_v43, %v1856_v30  ;;  %v2641_v29 = vrot.slane %v1259_v16, 9 }
 0x17e   : > { %v1925_v14 = vmax.f32 %v1285_v36, %v2648_v13  ;;  %v1951_v35 = vmax.f32 %v3380_v26, %v1855_v20  ;;  %v1268_v53 = vcombine.high %v1266_v44, %v1266_v44  ;;  %v2642_v27 = vrot.slane %v1267_v33, 9 }
 0x17f   : > { %v1953_v19 = vmax.f32 %v1849_v0, %v1857_v40  ;;  %v2161_v58 = vrot.slane %v1952_v34, %v2969_v21  ;;  %v2643_v60 = vrot.slane %v1266_v44, 9  ;;  %v1918_v39 = vmax.f32 %v1259_v16, %v2641_v29 }
 0x180   : > { %v2153_v15 = vrot.slane %v1950_v50, %v2969_v21  ;;  %v2157_v51 = vrot.slane %v1951_v35, %v2969_v21  ;;  %v2644_v41 = vrot.slane %v1268_v53, 9  ;;  %v1919_v6 = vmax.f32 %v1267_v33, %v2642_v27 }
 0x181   : > { %v1988_v43 = vmax.f32 %v3372_v11, %v3398_v61  ;;  %v2165_v2 = vrot.slane %v1953_v19, %v2969_v21  ;;  %v1920_v52 = vmax.f32 %v1266_v44, %v2643_v60  ;;  %v1982_v26 = vmax.f32 %v3383_v31, %v1918_v39 }
 0x182   : > { %v1957_v36 = vmax.f32 %v3363_v4, %v1861_v46  ;;  %v2338_v37 = vsel %vm2310_vm2, %v2157_v51, %v2153_v15  ;;  %v1921_v0 = vmax.f32 %v1268_v53, %v2644_v41  ;;  %v1983_v23 = vmax.f32 %v3385_v32, %v1919_v6 }
 0x183   : > { %v2173_v57 = vrot.slane %v1955_v1, %v2969_v21  ;;  %v1987_v12 = vmax.f32 %v3370_v49, %v1923_v9  ;;  %v2339_v45 = vsel %vm2312_vm3, %v2161_v58, %v2338_v37  ;;  %v1984_v11 = vmax.f32 %v3387_v47, %v1920_v52 }
 0x184   : > { %v2340_v28 = vsel %vm2314_vm4, %v2165_v2, %v2339_v45  ;;  %v1985_v25 = vmax.f32 %v3389_v22, %v1921_v0  ;;  %v2281_v31 = vrot.slane %v1982_v26, %v2969_v21  ;;  %v2285_v4 = vrot.slane %v1983_v23, %v2969_v21 }
 0x185   : > { %v2177_v42 = vrot.slane %v1956_v8, %v2969_v21  ;;  %v1989_v32 = vmax.f32 %v3375_v18, %v1925_v14  ;;  %v2341_v3 = vsel %vm2316_vm5, %v2169_v24, %v2340_v28  ;;  %v2289_v49 = vrot.slane %v1984_v11, %v2969_v21 }
 0x186   : > { %v2181_v55 = vrot.slane %v1957_v36, %v2969_v21  ;;  %v2342_v47 = vsel %vm2318_vm6, %v2173_v57, %v2341_v3  ;;  %v2293_v22 = vrot.slane %v1985_v25, %v2969_v21  ;;  %v2366_v13 = vsel %vm2310_vm2, %v2285_v4, %v2281_v31 }
 0x187   : > { %v2297_v61 = vrot.slane %v1986_v17, %v2969_v21  ;;  %v2343_v54 = vsel %vm2320_vm7, %v2177_v42, %v2342_v47  ;;  %v2367_v46 = vsel %vm2312_vm3, %v2289_v49, %v2366_v13  ;;  %v2301_v18 = vrot.slane %v1987_v12, %v2969_v21 }
 0x188   : > { %v2344_v7 = vsel %vm2322_vm8, %v2181_v55, %v2343_v54  ;;  %v2368_v63 = vsel %vm2314_vm4, %v2293_v22, %v2367_v46  ;;  %v2305_v62 = vrot.slane %v1988_v43, %v2969_v21  ;;  %v2309_v9 = vrot.slane %v1989_v32, %v2969_v21 }
 0x189   : > { %2385 = vst.msk [vmem:[%s3087_s14 + $0x18] sm:$0xff] %vm2381_vm9, %v2344_v7  ;;  %v2369_v8 = vsel %vm2316_vm5, %v2297_v61, %v2368_v63 }
 0x18a   : > { %v2370_v48 = vsel %vm2318_vm6, %v2301_v18, %v2369_v8 }
 0x18b   : > { %v2371_v10 = vsel %vm2320_vm7, %v2305_v62, %v2370_v48 }
 0x18c   : > { %v2372_v5 = vsel %vm2322_vm8, %v2309_v9, %v2371_v10 }
 0x18d   : > { %2389 = vst.msk [vmem:[%s3087_s14 + $0x38] sm:$0xff] %vm2381_vm9, %v2372_v5 }
 0x18e PF: > { %s14_s17 = sadd.s32 1, %s2807_s17   ;;  %s3467_s15 = smov %s2803_s16 }
 0x18f   : > { %p11_p5 = scmp.ge.s32.totalorder %s14_s17, 4   ;;  %s3468_s16 = smov %s3470_s18 }
 0x191   :  { %13 = sbr.rel (!%p11_p5) target bundleno = 2 (0x2), region = 66 }

</bundles_post_ra>
